<compile_context>
chip_gen: v7x
topology: tpu7x:2x2x1
jax: 0.10.0
libtpu: 0.0.40
codegen_flags: <defaults>
</compile_context>

<pallas_src>
import functools

import jax
import jax.numpy as jnp
from jax.experimental import pallas as pl
from jax.experimental.pallas import tpu as pltpu


# ------------------------------- fused kernel ------------------------------ #

def lenet_mlp_kernel(x_ref, w1_ref, b1_ref, w2_ref, b2_ref, w3_ref, b3_ref,
                     o_ref):
    # x_ref : (Bt, F) bf16  pooled activation, F = C*Ho*Wo in torch.flatten order
    # w1    : (F, 128) bf16     b1: (1, 128) f32   (cols >= 120 are zero)
    # w2    : (128, 128) f32    b2: (1, 128) f32   (rows >= 120 / cols >= 84 zero)
    # w3    : (128, 128) f32    b3: (1, 128) f32   (padded logit cols carry -1e30 bias)
    # o_ref : (Bt, 128) f32  log_softmax; first 10 columns are the real classes.

    # fc1: bf16 x bf16 operands, f32 accumulation on the MXU (this matmul is the
    # only sizeable one and is pure weight/activation bandwidth at small batch).
    h1 = jnp.dot(x_ref[...], w1_ref[...],
                 preferred_element_type=jnp.float32) + b1_ref[...]
    h1 = jnp.maximum(h1, 0.0)                               # padded lanes stay 0

    # fc2 / fc3 stay f32: ~2% of the FLOPs, not worth the extra rounding.
    h2 = jnp.dot(h1, w2_ref[...], preferred_element_type=jnp.float32) + b2_ref[...]
    h2 = jnp.maximum(h2, 0.0)                               # padded lanes stay 0
    logits = jnp.dot(h2, w3_ref[...], preferred_element_type=jnp.float32) + b3_ref[...]

    # log_softmax over the lane dim; padded columns sit at ~-1e30 -> exp == 0.
    m = jnp.max(logits, axis=-1, keepdims=True)
    s = logits - m
    lse = jnp.log(jnp.sum(jnp.exp(s), axis=-1, keepdims=True))
    o_ref[...] = s - lse


# ------------------------------ host wrappers ------------------------------ #

def _round_up(n, m):
    return ((n + m - 1) // m) * m


def _resident(shape):
    """BlockSpec whose block index is constant across the (batch) grid axis, so
    the block (weights / biases) stays resident in VMEM across grid steps.
    Default double-buffering of these small blocks costs ~3 MiB total, which is
    negligible on every generation, so the default pipeline mode is kept."""
    zeros = (0,) * len(shape)
    return pl.BlockSpec(shape, lambda i, zeros=zeros: zeros)


def _pick_batch_tile(batch, cap=256, min_grid=2):
    """Batch tile for the pooled bf16 activation:
      * tiny batches -> one grid step with block dims == full array dims;
      * otherwise a multiple of 16 (bf16 sublane packing), capped at `cap`, and
        small enough that the grid has >= `min_grid` steps so
        dimension_semantics=("parallel",) can shard across v7x's two TCs.
    The caller pads the batch up to a multiple of the tile, so there is no
    'tile = whole batch' VMEM cliff for awkward batch sizes."""
    if batch <= 16 * min_grid:
        return batch
    return min(cap, _round_up(pl.cdiv(batch, min_grid), 16))


def _lenet_pallas(pooled, kp, bt):
    B, F = pooled.shape
    grid = (B // bt,)
    return pl.pallas_call(
        lenet_mlp_kernel,
        out_shape=jax.ShapeDtypeStruct((B, 128), jnp.float32),
        grid=grid,
        in_specs=[
            pl.BlockSpec((bt, F), lambda i: (i, 0)),   # pooled bf16 activation tile
            _resident((F, 128)),                       # fc1 weight (bf16)
            _resident((1, 128)),                       # fc1 bias
            _resident((128, 128)),                     # fc2 weight
            _resident((1, 128)),                       # fc2 bias
            _resident((128, 128)),                     # fc3 weight
            _resident((1, 128)),                       # fc3 bias
        ],
        out_specs=pl.BlockSpec((bt, 128), lambda i: (i, 0)),
        compiler_params=pltpu.CompilerParams(
            dimension_semantics=("parallel",),
            # Working set at bt=256 is ~10 MiB (2x 3 MiB activation buffers +
            # ~3.3 MiB weights + small temporaries): fits the 32 MiB scoped
            # default on every generation, including v7x's 64 MiB physical VMEM.
            vmem_limit_bytes=32 * 1024 * 1024,
        ),
    )(pooled, kp["w1"], kp["b1"], kp["w2"], kp["b2"], kp["w3"], kp["b3"])


@functools.partial(jax.jit, static_argnames=("num_classes",))
def lenet_forward(x, kparams, num_classes=10):
    B, C, H, W = x.shape
    Ho, Wo = H // 2, W // 2
    F = C * Ho * Wo

    # BatchNorm(eval) + ReLU + MaxPool2d(2,2) + flatten, fused by XLA into a
    # single pass over x that writes the 8x smaller pooled bf16 activation,
    # which is all the Pallas kernel has to stream from HBM.
    # TODO(synk): pull BN+ReLU+MaxPool back inside the Pallas kernel once Mosaic
    # lowers the (B, C, 32, 32) -> lane-dense pooled relayout without a
    # materialized copy; host-side placement is what the perf review asked for.
    y = jnp.maximum(x * kparams["scale"] + kparams["shift"], 0.0)
    pooled = y.reshape(B, C, Ho, 2, Wo, 2).max(axis=(3, 5)).reshape(B, F)
    pooled = pooled.astype(jnp.bfloat16)

    bt = _pick_batch_tile(B)
    b_pad = _round_up(B, bt)
    if b_pad != B:                                    # masked tail via zero-pad
        pooled = jnp.pad(pooled, ((0, b_pad - B), (0, 0)))

    out = _lenet_pallas(pooled, kparams, bt)
    return out[:B, :num_classes]


# --------------------- parameter setup (one-time, host) -------------------- #

def init_params(key):
    """Deterministic parameters in the PyTorch module's native layout."""
    C = 24
    d1, d2, d3, d4 = C * 16 * 16, 120, 84, 10
    keys = jax.random.split(key, 10)

    def linear_init(kw, kb, fan_in, fan_out):
        bound = 1.0 / jnp.sqrt(fan_in)
        w = jax.random.uniform(kw, (fan_out, fan_in), jnp.float32, -bound, bound)
        b = jax.random.uniform(kb, (fan_out,), jnp.float32, -bound, bound)
        return w, b

    fc1_w, fc1_b = linear_init(keys[0], keys[1], d1, d2)
    fc2_w, fc2_b = linear_init(keys[2], keys[3], d2, d3)
    fc3_w, fc3_b = linear_init(keys[4], keys[5], d3, d4)

    return dict(
        bn_gamma=jax.random.uniform(keys[6], (C,), jnp.float32, 0.5, 1.5),
        bn_beta=jax.random.uniform(keys[7], (C,), jnp.float32, -0.5, 0.5),
        bn_mean=jax.random.uniform(keys[8], (C,), jnp.float32, -0.5, 0.5),
        bn_var=jax.random.uniform(keys[9], (C,), jnp.float32, 0.5, 1.5),
        fc1_w=fc1_w, fc1_b=fc1_b,
        fc2_w=fc2_w, fc2_b=fc2_b,
        fc3_w=fc3_w, fc3_b=fc3_b,
    )


def prepare_params(p, eps=1e-5):
    """One-time: fold BN into per-channel scale/shift (NCHW broadcastable),
    pre-transpose fc weights to (in, out), zero-pad hidden/output dims to 128,
    cast fc1 to bf16."""
    C = p["bn_gamma"].shape[0]
    d_in = p["fc1_w"].shape[1]
    H1 = H2 = O = 128
    n_classes = int(p["fc3_b"].shape[0])

    scale = p["bn_gamma"] / jnp.sqrt(p["bn_var"] + eps)
    shift = p["bn_beta"] - p["bn_mean"] * scale

    def pad2(w, rows, cols):
        r0, c0 = w.shape
        return jnp.pad(w, ((0, rows - r0), (0, cols - c0)))

    def pad1(b, n):
        return jnp.pad(b, (0, n - b.shape[0]))

    w1 = pad2(p["fc1_w"].T, d_in, H1).astype(jnp.bfloat16)
    b1 = pad1(p["fc1_b"], H1).reshape(1, H1).astype(jnp.float32)
    w2 = pad2(p["fc2_w"].T, H1, H2).astype(jnp.float32)
    b2 = pad1(p["fc2_b"], H2).reshape(1, H2).astype(jnp.float32)
    w3 = pad2(p["fc3_w"].T, H2, O).astype(jnp.float32)
    # Padded logit columns get a huge negative bias so they contribute exp()==0
    # to the softmax denominator; they are sliced off outside the kernel.
    b3 = pad1(p["fc3_b"], O).at[n_classes:].set(-1e30).reshape(1, O).astype(jnp.float32)

    kparams = dict(
        scale=scale.reshape(1, C, 1, 1).astype(jnp.float32),
        shift=shift.reshape(1, C, 1, 1).astype(jnp.float32),
        w1=w1, b1=b1, w2=w2, b2=b2, w3=w3, b3=b3,
    )
    return kparams, n_classes


# ----------------------- pure-JAX reference (testing) ----------------------- #

def lenet_reference(x, params, *, bf16_fc1=False, eps=1e-5):
    scale = params["bn_gamma"] / jnp.sqrt(params["bn_var"] + eps)
    shift = params["bn_beta"] - params["bn_mean"] * scale
    y = x * scale[None, :, None, None] + shift[None, :, None, None]
    y = jnp.maximum(y, 0.0)
    B, C, H, W = y.shape
    y = y.reshape(B, C, H // 2, 2, W // 2, 2).max(axis=(3, 5))
    y = y.reshape(B, -1)
    w1t = params["fc1_w"].T
    if bf16_fc1:
        # Mirrors the pipeline: pooled activation stored in bf16, bf16 weights,
        # f32 accumulation on the MXU.
        h1 = jnp.dot(y.astype(jnp.bfloat16), w1t.astype(jnp.bfloat16),
                     preferred_element_type=jnp.float32) + params["fc1_b"]
    else:
        h1 = y @ w1t + params["fc1_b"]
    h1 = jnp.maximum(h1, 0.0)
    h2 = jnp.maximum(h1 @ params["fc2_w"].T + params["fc2_b"], 0.0)
    logits = h2 @ params["fc3_w"].T + params["fc3_b"]
    return jax.nn.log_softmax(logits, axis=1)


if __name__ == "__main__":
    key = jax.random.PRNGKey(0)
    k_x, k_p = jax.random.split(key)

    # fc1 expects 24*16*16 features after the 2x2 maxpool -> input is (B, 24, 32, 32)
    x = jax.random.normal(k_x, (2, 24, 32, 32), jnp.float32)
    params = init_params(k_p)
    kparams, num_classes = prepare_params(params)       # one-time weight prep

    out = lenet_forward(x, kparams, num_classes=num_classes)
    out = jax.block_until_ready(out)
    assert out.shape == (2, 10), out.shape

    # Tight check against a reference that mirrors the bf16 pooled activation / fc1.
    ref_mixed = lenet_reference(x, params, bf16_fc1=True)
    err_mixed = float(jnp.max(jnp.abs(out - ref_mixed)))
    assert err_mixed < 2e-3, f"mixed-precision ref max abs err = {err_mixed}"

    # Loose semantic check against the all-f32 PyTorch-equivalent reference.
    ref_f32 = lenet_reference(x, params, bf16_fc1=False)
    err_f32 = float(jnp.max(jnp.abs(out - ref_f32)))
    assert err_f32 < 5e-2, f"f32 ref max abs err = {err_f32}"

    print("KERNEL_OK")
</pallas_src>

<mosaic_0001>
module attributes {stable_mosaic.version = 11 : i64} {
  func.func @lenet_mlp_kernel(%arg0: i32, %arg1: memref<2x6144xbf16, #tpu.memory_space<vmem>>, %arg2: memref<6144x128xbf16, #tpu.memory_space<vmem>>, %arg3: memref<1x128xf32, #tpu.memory_space<vmem>>, %arg4: memref<128x128xf32, #tpu.memory_space<vmem>>, %arg5: memref<1x128xf32, #tpu.memory_space<vmem>>, %arg6: memref<128x128xf32, #tpu.memory_space<vmem>>, %arg7: memref<1x128xf32, #tpu.memory_space<vmem>>, %arg8: memref<2x128xf32, #tpu.memory_space<vmem>>) attributes {dimension_semantics = [#tpu.dimension_semantics<parallel>], iteration_bounds = array<i64: 1>, scalar_prefetch = 0 : i64, scratch_operands = 0 : i64, tpu.core_type = #tpu.core_type<tc>, window_params = [{transform_indices = @transform_0, window_bounds = array<i64: 2, 6144>}, {pipeline_mode = #tpu.pipeline_mode<synchronous>, transform_indices = @transform_1, window_bounds = array<i64: 6144, 128>}, {pipeline_mode = #tpu.pipeline_mode<synchronous>, transform_indices = @transform_2, window_bounds = array<i64: 1, 128>}, {pipeline_mode = #tpu.pipeline_mode<synchronous>, transform_indices = @transform_3, window_bounds = array<i64: 128, 128>}, {pipeline_mode = #tpu.pipeline_mode<synchronous>, transform_indices = @transform_4, window_bounds = array<i64: 1, 128>}, {pipeline_mode = #tpu.pipeline_mode<synchronous>, transform_indices = @transform_5, window_bounds = array<i64: 128, 128>}, {pipeline_mode = #tpu.pipeline_mode<synchronous>, transform_indices = @transform_6, window_bounds = array<i64: 1, 128>}, {transform_indices = @transform_7, window_bounds = array<i64: 2, 128>}]} {
    %c0 = arith.constant 0 : index
    %c0_0 = arith.constant 0 : index
    %0 = vector.load %arg1[%c0, %c0_0] : memref<2x6144xbf16, #tpu.memory_space<vmem>>, vector<2x6144xbf16>
    %c0_1 = arith.constant 0 : index
    %c0_2 = arith.constant 0 : index
    %1 = vector.load %arg2[%c0_1, %c0_2] : memref<6144x128xbf16, #tpu.memory_space<vmem>>, vector<6144x128xbf16>
    %cst = arith.constant dense<0.000000e+00> : vector<2x128xf32>
    %2 = tpu.matmul %0, %1, %cst {dimension_numbers = #tpu.dot_dimension_numbers<[1], [0], [0], [1], [0, 0, 1, 1], [], []>} : vector<2x6144xbf16>, vector<6144x128xbf16>, vector<2x128xf32> -> vector<2x128xf32>
    %c0_3 = arith.constant 0 : index
    %c0_4 = arith.constant 0 : index
    %3 = vector.load %arg3[%c0_3, %c0_4] : memref<1x128xf32, #tpu.memory_space<vmem>>, vector<1x128xf32>
    %4 = vector.broadcast %3 : vector<1x128xf32> to vector<2x128xf32>
    %5 = arith.addf %2, %4 : vector<2x128xf32>
    %cst_5 = arith.constant 0.000000e+00 : f32
    %6 = vector.broadcast %cst_5 : f32 to vector<2x128xf32>
    %7 = arith.maximumf %5, %6 : vector<2x128xf32>
    %c0_6 = arith.constant 0 : index
    %c0_7 = arith.constant 0 : index
    %8 = vector.load %arg4[%c0_6, %c0_7] : memref<128x128xf32, #tpu.memory_space<vmem>>, vector<128x128xf32>
    %cst_8 = arith.constant dense<0.000000e+00> : vector<2x128xf32>
    %9 = tpu.matmul %7, %8, %cst_8 {dimension_numbers = #tpu.dot_dimension_numbers<[1], [0], [0], [1], [0, 0, 1, 1], [], []>} : vector<2x128xf32>, vector<128x128xf32>, vector<2x128xf32> -> vector<2x128xf32>
    %c0_9 = arith.constant 0 : index
    %c0_10 = arith.constant 0 : index
    %10 = vector.load %arg5[%c0_9, %c0_10] : memref<1x128xf32, #tpu.memory_space<vmem>>, vector<1x128xf32>
    %11 = vector.broadcast %10 : vector<1x128xf32> to vector<2x128xf32>
    %12 = arith.addf %9, %11 : vector<2x128xf32>
    %cst_11 = arith.constant 0.000000e+00 : f32
    %13 = vector.broadcast %cst_11 : f32 to vector<2x128xf32>
    %14 = arith.maximumf %12, %13 : vector<2x128xf32>
    %c0_12 = arith.constant 0 : index
    %c0_13 = arith.constant 0 : index
    %15 = vector.load %arg6[%c0_12, %c0_13] : memref<128x128xf32, #tpu.memory_space<vmem>>, vector<128x128xf32>
    %cst_14 = arith.constant dense<0.000000e+00> : vector<2x128xf32>
    %16 = tpu.matmul %14, %15, %cst_14 {dimension_numbers = #tpu.dot_dimension_numbers<[1], [0], [0], [1], [0, 0, 1, 1], [], []>} : vector<2x128xf32>, vector<128x128xf32>, vector<2x128xf32> -> vector<2x128xf32>
    %c0_15 = arith.constant 0 : index
    %c0_16 = arith.constant 0 : index
    %17 = vector.load %arg7[%c0_15, %c0_16] : memref<1x128xf32, #tpu.memory_space<vmem>>, vector<1x128xf32>
    %18 = vector.broadcast %17 : vector<1x128xf32> to vector<2x128xf32>
    %19 = arith.addf %16, %18 : vector<2x128xf32>
    %cst_17 = arith.constant dense<0xFF800000> : vector<2xf32>
    %20 = vector.multi_reduction <maximumf>, %19, %cst_17 [1] : vector<2x128xf32> to vector<2xf32>
    %21 = vector.shape_cast %20 : vector<2xf32> to vector<2x1xf32>
    %22 = vector.broadcast %21 : vector<2x1xf32> to vector<2x128xf32>
    %23 = arith.subf %19, %22 : vector<2x128xf32>
    %24 = math.exp %23 : vector<2x128xf32>
    %cst_18 = arith.constant dense<0.000000e+00> : vector<2xf32>
    %25 = vector.multi_reduction <add>, %24, %cst_18 [1] : vector<2x128xf32> to vector<2xf32>
    %26 = vector.shape_cast %25 : vector<2xf32> to vector<2x1xf32>
    %27 = math.log %26 : vector<2x1xf32>
    %28 = vector.broadcast %27 : vector<2x1xf32> to vector<2x128xf32>
    %29 = arith.subf %23, %28 : vector<2x128xf32>
    %c0_19 = arith.constant 0 : index
    %c0_20 = arith.constant 0 : index
    %30 = vector.load %arg8[%c0_19, %c0_20] : memref<2x128xf32, #tpu.memory_space<vmem>>, vector<2x128xf32>
    tpu.vector_store %arg8[%c0_19, %c0_20], %29 {strides = array<i32>} : memref<2x128xf32, #tpu.memory_space<vmem>>, vector<2x128xf32>,
    return
  }
  func.func @transform_0(%arg0: i32) -> (i32, i32) {
    %c0_i32 = arith.constant 0 : i32
    %c0_i32_0 = arith.constant 0 : i32
    return %arg0, %c0_i32 : i32, i32
  }
  func.func @transform_1(%arg0: i32) -> (i32, i32) {
    %c0_i32 = arith.constant 0 : i32
    %c0_i32_0 = arith.constant 0 : i32
    %c0_i32_1 = arith.constant 0 : i32
    return %c0_i32, %c0_i32_0 : i32, i32
  }
  func.func @transform_2(%arg0: i32) -> (i32, i32) {
    %c0_i32 = arith.constant 0 : i32
    %c0_i32_0 = arith.constant 0 : i32
    %c0_i32_1 = arith.constant 0 : i32
    return %c0_i32, %c0_i32_0 : i32, i32
  }
  func.func @transform_3(%arg0: i32) -> (i32, i32) {
    %c0_i32 = arith.constant 0 : i32
    %c0_i32_0 = arith.constant 0 : i32
    %c0_i32_1 = arith.constant 0 : i32
    return %c0_i32, %c0_i32_0 : i32, i32
  }
  func.func @transform_4(%arg0: i32) -> (i32, i32) {
    %c0_i32 = arith.constant 0 : i32
    %c0_i32_0 = arith.constant 0 : i32
    %c0_i32_1 = arith.constant 0 : i32
    return %c0_i32, %c0_i32_0 : i32, i32
  }
  func.func @transform_5(%arg0: i32) -> (i32, i32) {
    %c0_i32 = arith.constant 0 : i32
    %c0_i32_0 = arith.constant 0 : i32
    %c0_i32_1 = arith.constant 0 : i32
    return %c0_i32, %c0_i32_0 : i32, i32
  }
  func.func @transform_6(%arg0: i32) -> (i32, i32) {
    %c0_i32 = arith.constant 0 : i32
    %c0_i32_0 = arith.constant 0 : i32
    %c0_i32_1 = arith.constant 0 : i32
    return %c0_i32, %c0_i32_0 : i32, i32
  }
  func.func @transform_7(%arg0: i32) -> (i32, i32) {
    %c0_i32 = arith.constant 0 : i32
    %c0_i32_0 = arith.constant 0 : i32
    return %arg0, %c0_i32 : i32, i32
  }
}

</mosaic_0001>

<bundles_post_ra>
// kernel: lenet_forward.1
= control target key start
LH: loop header
LB: loop body
LE: loop exit
PB: predicated region body
PF: predicated region fallthrough
CT: control target
= control target key end

     0   :  { %v819_v28 = vlaneseq  ;;  %v6127_v36 = vmov 1966171168   ;;  %s7555_s0 = inlined_call_operand.vmem [shape: bf16[2,6144], index: 0, kind: input, shape index: {}]   ;;  %s7556_s1 = inlined_call_operand.vmem [shape: bf16[6144,128], index: 1, kind: input, shape index: {}]   ;;  %s7557_s2 = inlined_call_operand.vmem [shape: f32[1,128], index: 2, kind: input, shape index: {}]   ;;  %s7558_s3 = inlined_call_operand.vmem [shape: f32[128,128], index: 3, kind: input, shape index: {}]   ;;  %s7559_s4 = inlined_call_operand.vmem [shape: f32[1,128], index: 4, kind: input, shape index: {}]   ;;  %s7560_s5 = inlined_call_operand.vmem [shape: f32[128,128], index: 5, kind: input, shape index: {}]   ;;  %s7561_s6 = inlined_call_operand.vmem [shape: f32[1,128], index: 6, kind: input, shape index: {}]   ;;  %s7562_s7 = inlined_call_operand.hbm [shape: f32[2,128], index: 7, kind: output, shape index: {}]  }
   0x1   :  { %v5709_v0 = vld [vmem:[%s7556_s1 + $0x40] sm:$0xff]   ;;  %v5713_v4 = vld [vmem:[%s7556_s1 + $0x48] sm:$0xff]   ;;  %v5717_v8 = vld [vmem:[%s7556_s1 + $0x50] sm:$0xff]   ;;  %v817_v37 = vunpack.c.l.s4 %v6127_v36 }
   0x2   :  { %v5710_v1 = vld [vmem:[%s7556_s1 + $0xc0] sm:$0xff]   ;;  %5024 = vmatprep.subr.bf16.mxu0 %v5709_v0  ;;  %v5714_v5 = vld [vmem:[%s7556_s1 + $0xc8] sm:$0xff]   ;;  %v5718_v9 = vld [vmem:[%s7556_s1 + $0xd0] sm:$0xff]   ;;  %v820_v33 = vshrl.u32 %v819_v28, 7 }
   0x3   :  { %v5711_v2 = vld [vmem:[%s7556_s1] sm:$0xff]   ;;  %5046 = vmatprep.subr.bf16.mxu1 %v5710_v1  ;;  %v5715_v6 = vld [vmem:[%s7556_s1 + $0x8] sm:$0xff]   ;;  %v5719_v10 = vld [vmem:[%s7556_s1 + $0x10] sm:$0xff]   ;;  %v818_v40 = vunpack.c.0.s8 %v817_v37 }
   0x4   :  { %v5712_v3 = vld [vmem:[%s7556_s1 + $0x80] sm:$0xff]   ;;  %5025 = vmatpush3.bf16.msra.mxu0 %v5711_v2  ;;  %v5716_v7 = vld [vmem:[%s7556_s1 + $0x88] sm:$0xff]   ;;  %v5720_v11 = vld [vmem:[%s7556_s1 + $0x90] sm:$0xff]  }
   0x5   :  { %5047 = vmatpush3.bf16.msra.mxu1 %v5712_v3  ;;  %5026 = vmatprep.subr.bf16.mxu0 %v5713_v4  ;;  %v5721_v12 = vld [vmem:[%s7556_s1 + $0x58] sm:$0xff]   ;;  %v5725_v16 = vld [vmem:[%s7556_s1 + $0x60] sm:$0xff]   ;;  %v5729_v20 = vld [vmem:[%s7556_s1 + $0x68] sm:$0xff]   ;;  %v6277_v41 = vsub.s32 %v818_v40, %v820_v33 }
   0x6   :  { %5048 = vmatprep.subr.bf16.mxu1 %v5714_v5  ;;  %v5722_v13 = vld [vmem:[%s7556_s1 + $0xd8] sm:$0xff]   ;;  %v5726_v17 = vld [vmem:[%s7556_s1 + $0xe0] sm:$0xff]   ;;  %v5730_v21 = vld [vmem:[%s7556_s1 + $0xe8] sm:$0xff]  }
   0x7   :  { %v5723_v14 = vld [vmem:[%s7556_s1 + $0x18] sm:$0xff]   ;;  %v5727_v18 = vld [vmem:[%s7556_s1 + $0x20] sm:$0xff]   ;;  %v5731_v22 = vld [vmem:[%s7556_s1 + $0x28] sm:$0xff]  }
   0x8   :  { %5027 = vmatpush3.bf16.msra.mxu0 %v5715_v6  ;;  %v5724_v15 = vld [vmem:[%s7556_s1 + $0x98] sm:$0xff]   ;;  %v5728_v19 = vld [vmem:[%s7556_s1 + $0xa0] sm:$0xff]   ;;  %v5732_v23 = vld [vmem:[%s7556_s1 + $0xa8] sm:$0xff]  }
   0x9   :  { %5049 = vmatpush3.bf16.msra.mxu1 %v5716_v7  ;;  %5028 = vmatprep.subr.bf16.mxu0 %v5717_v8  ;;  %v5733_v24 = vld [vmem:[%s7556_s1 + $0x70] sm:$0xff]   ;;  %v5737_v29 = vld [vmem:[%s7556_s1 + $0x78] sm:$0xff]   ;;  %v28_v34 = vld [vmem:[%s7555_s0] sm:$0xff] }
   0xa   :  { %5050 = vmatprep.subr.bf16.mxu1 %v5718_v9  ;;  %v5734_v25 = vld [vmem:[%s7556_s1 + $0xf0] sm:$0xff]   ;;  %v5738_v30 = vld [vmem:[%s7556_s1 + $0xf8] sm:$0xff]   ;;  %v5742_v35 = vld [vmem:[%s7556_s1 + $0x140] sm:$0xff]   ;;  %v815_v39 = vcombine.high %v28_v34, %v28_v34  ;;  %v822_v42 = vrot.slane %v28_v34, %v6277_v41 }
   0xb   :  { %v5735_v26 = vld [vmem:[%s7556_s1 + $0x30] sm:$0xff]   ;;  %v5739_v31 = vld [vmem:[%s7556_s1 + $0x38] sm:$0xff]   ;;  %v5743_v38 = vld [vmem:[%s7556_s1 + $0x1c0] sm:$0xff]  }
   0xc   :  { %5029 = vmatpush3.bf16.msra.mxu0 %v5719_v10  ;;  %v5736_v27 = vld [vmem:[%s7556_s1 + $0xb0] sm:$0xff]   ;;  %v5740_v32 = vld [vmem:[%s7556_s1 + $0xb8] sm:$0xff]   ;;  %v6281_v43 = vrot.slane %v815_v39, %v6277_v41  ;;  %v830_v44 = vcombine.high %v822_v42, %v822_v42  ;;  %v838_v45 = vrot.slane %v822_v42, %v6277_v41  ;;  %v5744_v47 = vld [vmem:[%s7556_s1 + $0x100] sm:$0xff]  }
   0xd   :  { %5051 = vmatpush3.bf16.msra.mxu1 %v5720_v11  ;;  %5030 = vmatprep.subr.bf16.mxu0 %v5721_v12  ;;  %v5745_v49 = vld [vmem:[%s7556_s1 + $0x180] sm:$0xff]   ;;  %v5746_v52 = vld [vmem:[%s7556_s1 + $0x148] sm:$0xff]   ;;  %v5750_v58 = vld [vmem:[%s7556_s1 + $0x150] sm:$0xff]  }
   0xe   :  { %5052 = vmatprep.subr.bf16.mxu1 %v5722_v13  ;;  %v831_v46 = vcombine.high %v6281_v43, %v6281_v43  ;;  %v852_v48 = vrot.slane %v830_v44, %v6277_v41  ;;  %v860_v51 = vcombine.high %v838_v45, %v838_v45  ;;  %v5747_v54 = vld [vmem:[%s7556_s1 + $0x1c8] sm:$0xff]   ;;  %v5751_v59 = vld [vmem:[%s7556_s1 + $0x1d0] sm:$0xff]   ;;  %v5754_v62 = vld [vmem:[%s7556_s1 + $0x158] sm:$0xff]  }
   0xf   :  { %v5748_v55 = vld [vmem:[%s7556_s1 + $0x108] sm:$0xff]   ;;  %v5752_v60 = vld [vmem:[%s7556_s1 + $0x110] sm:$0xff]   ;;  %v5755_v63 = vld [vmem:[%s7556_s1 + $0x1d8] sm:$0xff]  }
  0x10   :  { %5031 = vmatpush3.bf16.msra.mxu0 %v5723_v14  ;;  %v859_v50 = vrot.slane %v831_v46, %v6277_v41  ;;  %3493 = vmatprep.mubr.bf16.mxu0 %v852_v48  ;;  %v862_v53 = vcombine.high %v852_v48, %v852_v48  ;;  %v5749_v57 = vld [vmem:[%s7556_s1 + $0x188] sm:$0xff]   ;;  %v5753_v61 = vld [vmem:[%s7556_s1 + $0x190] sm:$0xff]   ;;  %v5756_v0 = vld [vmem:[%s7556_s1 + $0x118] sm:$0xff]  }
  0x11   :  { %5053 = vmatpush3.bf16.msra.mxu1 %v5724_v15  ;;  %5032 = vmatprep.subr.bf16.mxu0 %v5725_v16  ;;  %v5757_v1 = vld [vmem:[%s7556_s1 + $0x198] sm:$0xff]   ;;  %v5758_v2 = vld [vmem:[%s7556_s1 + $0x160] sm:$0xff]   ;;  %v5762_v6 = vld [vmem:[%s7556_s1 + $0x168] sm:$0xff]  }
  0x12   :  { %5054 = vmatprep.subr.bf16.mxu1 %v5726_v17  ;;  %v863_v56 = vcombine.high %v859_v50, %v859_v50  ;;  %3533 = vmatprep.mubr.bf16.mxu1 %v862_v53  ;;  %v5759_v3 = vld [vmem:[%s7556_s1 + $0x1e0] sm:$0xff]   ;;  %v5763_v7 = vld [vmem:[%s7556_s1 + $0x1e8] sm:$0xff]   ;;  %v5766_v10 = vld [vmem:[%s7556_s1 + $0x170] sm:$0xff]  }
  0x13   :  { %v5760_v4 = vld [vmem:[%s7556_s1 + $0x120] sm:$0xff]   ;;  %v5764_v8 = vld [vmem:[%s7556_s1 + $0x128] sm:$0xff]   ;;  %v5767_v11 = vld [vmem:[%s7556_s1 + $0x1f0] sm:$0xff]  }
  0x14   :  { %5033 = vmatpush3.bf16.msra.mxu0 %v5727_v18  ;;  %v5761_v5 = vld [vmem:[%s7556_s1 + $0x1a0] sm:$0xff]   ;;  %v5765_v9 = vld [vmem:[%s7556_s1 + $0x1a8] sm:$0xff]   ;;  %v5768_v12 = vld [vmem:[%s7556_s1 + $0x130] sm:$0xff]   ;;  %v845_v18 = vrot.slane %v6281_v43, %v6277_v41 }
  0x15   :  { %5055 = vmatpush3.bf16.msra.mxu1 %v5728_v19  ;;  %5034 = vmatprep.subr.bf16.mxu0 %v5729_v20  ;;  %v5769_v13 = vld [vmem:[%s7556_s1 + $0x1b0] sm:$0xff]   ;;  %v5770_v14 = vld [vmem:[%s7556_s1 + $0x178] sm:$0xff]   ;;  %v5774_v19 = vld [vmem:[%s7556_s1 + $0x240] sm:$0xff]  }
  0x16   :  { %5056 = vmatprep.subr.bf16.mxu1 %v5730_v21  ;;  %v5771_v15 = vld [vmem:[%s7556_s1 + $0x1f8] sm:$0xff]   ;;  %v5775_v20 = vld [vmem:[%s7556_s1 + $0x2c0] sm:$0xff]   ;;  %v5782_v28 = vld [vmem:[%s7556_s1 + $0x250] sm:$0xff]  }
  0x17   :  { %v5772_v16 = vld [vmem:[%s7556_s1 + $0x138] sm:$0xff]   ;;  %v5776_v21 = vld [vmem:[%s7556_s1 + $0x200] sm:$0xff]   ;;  %v5794_v40 = vld [vmem:[%s7556_s1 + $0x268] sm:$0xff]  }
  0x18   :  { %5035 = vmatpush3.bf16.msra.mxu0 %v5731_v22  ;;  %v5773_v17 = vld [vmem:[%s7556_s1 + $0x1b8] sm:$0xff]   ;;  %v5777_v22 = vld [vmem:[%s7556_s1 + $0x280] sm:$0xff]   ;;  %v5795_v42 = vld [vmem:[%s7556_s1 + $0x2e8] sm:$0xff]  }
  0x19   :  { %5057 = vmatpush3.bf16.msra.mxu1 %v5732_v23  ;;  %5036 = vmatprep.subr.bf16.mxu0 %v5733_v24  ;;  %v861_v23 = vcombine.high %v845_v18, %v845_v18  ;;  %v5778_v24 = vld [vmem:[%s7556_s1 + $0x248] sm:$0xff]   ;;  %v5787_v33 = vld [vmem:[%s7556_s1 + $0x2d8] sm:$0xff]   ;;  %v5790_v36 = vld [vmem:[%s7556_s1 + $0x260] sm:$0xff]  }
  0x1a   :  { %5058 = vmatprep.subr.bf16.mxu1 %v5734_v25  ;;  %v5779_v25 = vld [vmem:[%s7556_s1 + $0x2c8] sm:$0xff]   ;;  %v5788_v34 = vld [vmem:[%s7556_s1 + $0x218] sm:$0xff]   ;;  %v5791_v37 = vld [vmem:[%s7556_s1 + $0x2e0] sm:$0xff]  }
  0x1b   :  { %v5793_v39 = vld [vmem:[%s7556_s1 + $0x2a0] sm:$0xff]   ;;  %v5796_v43 = vld [vmem:[%s7556_s1 + $0x228] sm:$0xff]  }
  0x1c   :  { %5037 = vmatpush3.bf16.msra.mxu0 %v5735_v26  ;;  %v5780_v26 = vld [vmem:[%s7556_s1 + $0x208] sm:$0xff]  }
  0x1d   :  { %5059 = vmatpush3.bf16.msra.mxu1 %v5736_v27  ;;  %5038 = vmatprep.subr.bf16.mxu0 %v5737_v29  ;;  %v5781_v27 = vld [vmem:[%s7556_s1 + $0x288] sm:$0xff]   ;;  %v5783_v29 = vld [vmem:[%s7556_s1 + $0x2d0] sm:$0xff]  }
  0x1e   :  { %5060 = vmatprep.subr.bf16.mxu1 %v5738_v30  ;;  %v5784_v30 = vld [vmem:[%s7556_s1 + $0x210] sm:$0xff]   ;;  %v5797_v44 = vld [vmem:[%s7556_s1 + $0x2a8] sm:$0xff]  }
  0x1f   :  { %v29_v46 = vld [vmem:[%s7555_s0 + $0x8] sm:$0xff] }
  0x20   :  { %5039 = vmatpush3.bf16.msra.mxu0 %v5739_v31  ;;  %v5785_v31 = vld [vmem:[%s7556_s1 + $0x290] sm:$0xff]   ;;  %v871_v48 = vrot.slane %v29_v46, %v6277_v41 }
  0x21   :  { %5061 = vmatpush3.bf16.msra.mxu1 %v5740_v32  ;;  %5068 = vmatprep.subr.bf16.mxu0 %v5742_v35  ;;  %v5786_v32 = vld [vmem:[%s7556_s1 + $0x258] sm:$0xff]  }
  0x22   :  { %5090 = vmatprep.subr.bf16.mxu1 %v5743_v38  ;;  %v5789_v35 = vld [vmem:[%s7556_s1 + $0x298] sm:$0xff]   ;;  %v5792_v38 = vld [vmem:[%s7556_s1 + $0x220] sm:$0xff]  }
  0x23   :  { %3494 = vmatmul.mubr.bf16.vlgmr.msra.gmra.mrb[0].mxu0 %v838_v45  ;;  %v5798_v45 = vld [vmem:[%s7556_s1 + $0x270] sm:$0xff]  }
  0x24   :  { %5069 = vmatpush3.bf16.msra.mxu0 %v5744_v47  ;;  %3534 = vmatmul.mubr.bf16.vlgmr.msra.gmra.mrb[0].mxu1 %v860_v51  ;;  %v5799_v47 = vld [vmem:[%s7556_s1 + $0x2f0] sm:$0xff]  }
  0x25   :  { %5070 = vmatprep.subr.bf16.mxu0 %v5746_v52  ;;  %5091 = vmatpush3.bf16.msra.mxu1 %v5745_v49  ;;  %v864_v49 = vcombine.high %v29_v46, %v29_v46  ;;  %v5801_v51 = vld [vmem:[%s7556_s1 + $0x2b0] sm:$0xff]   ;;  %v879_v52 = vcombine.high %v871_v48, %v871_v48 }
  0x26   :  { %3573 = vmatprep.mubr.bf16.mxu0 %v859_v50  ;;  %5092 = vmatprep.subr.bf16.mxu1 %v5747_v54  ;;  %v5800_v50 = vld [vmem:[%s7556_s1 + $0x230] sm:$0xff]   ;;  %v5802_v54 = vld [vmem:[%s7556_s1 + $0x278] sm:$0xff]  }
  0x27   :  { %3613 = vmatprep.mubr.bf16.mxu1 %v863_v56  ;;  %v6469_v53 = vrot.slane %v864_v49, %v6277_v41  ;;  %v901_v56 = vrot.slane %v879_v52, %v6277_v41  ;;  %v5849_v46 = vld [vmem:[%s7556_s1 + $0x410] sm:$0xff]   ;;  %v5852_v49 = vld [vmem:[%s7556_s1 + $0x4d8] sm:$0xff]   ;;  %v5855_v52 = vld [vmem:[%s7556_s1 + $0x460] sm:$0xff]  }
  0x28   :  { %5071 = vmatpush3.bf16.msra.mxu0 %v5748_v55  ;;  %v5803_v55 = vld [vmem:[%s7556_s1 + $0x2f8] sm:$0xff]  }
  0x29   :  { %5072 = vmatprep.subr.bf16.mxu0 %v5750_v58  ;;  %5093 = vmatpush3.bf16.msra.mxu1 %v5749_v57  ;;  %v880_v57 = vcombine.high %v6469_v53, %v6469_v53  ;;  %v5804_v58 = vld [vmem:[%s7556_s1 + $0x238] sm:$0xff]  }
  0x2a   :  { %5094 = vmatprep.subr.bf16.mxu1 %v5751_v59  ;;  %v5805_v59 = vld [vmem:[%s7556_s1 + $0x2b8] sm:$0xff]  }
  0x2c   :  { %5073 = vmatpush3.bf16.msra.mxu0 %v5752_v60  ;;  %v911_v60 = vcombine.high %v901_v56, %v901_v56 }
  0x2d   :  { %5074 = vmatprep.subr.bf16.mxu0 %v5754_v62  ;;  %5095 = vmatpush3.bf16.msra.mxu1 %v5753_v61  ;;  %v887_v61 = vrot.slane %v871_v48, %v6277_v41  ;;  %v5806_v62 = vld [vmem:[%s7556_s1 + $0x340] sm:$0xff]   ;;  %v5851_v48 = vld [vmem:[%s7556_s1 + $0x458] sm:$0xff]  }
  0x2e   :  { %5096 = vmatprep.subr.bf16.mxu1 %v5755_v63  ;;  %v5807_v63 = vld [vmem:[%s7556_s1 + $0x3c0] sm:$0xff]  }
  0x30   :  { %5075 = vmatpush3.bf16.msra.mxu0 %v5756_v0  ;;  %v908_v0 = vrot.slane %v880_v57, %v6277_v41  ;;  %v5860_v57 = vld [vmem:[%s7556_s1 + $0x4e8] sm:$0xff]  }
  0x31   :  { %5076 = vmatprep.subr.bf16.mxu0 %v5758_v2  ;;  %5097 = vmatpush3.bf16.msra.mxu1 %v5757_v1  ;;  %v5808_v1 = vld [vmem:[%s7556_s1 + $0x300] sm:$0xff]  }
  0x32   :  { %5098 = vmatprep.subr.bf16.mxu1 %v5759_v3  ;;  %v5809_v2 = vld [vmem:[%s7556_s1 + $0x380] sm:$0xff]   ;;  %v909_v3 = vcombine.high %v887_v61, %v887_v61 }
  0x34   :  { %5077 = vmatpush3.bf16.msra.mxu0 %v5760_v4  ;;  %v5810_v4 = vld [vmem:[%s7556_s1 + $0x348] sm:$0xff]  }
  0x35   :  { %5078 = vmatprep.subr.bf16.mxu0 %v5762_v6  ;;  %5099 = vmatpush3.bf16.msra.mxu1 %v5761_v5  ;;  %v5811_v5 = vld [vmem:[%s7556_s1 + $0x3c8] sm:$0xff]   ;;  %v912_v6 = vcombine.high %v908_v0, %v908_v0 }
  0x36   :  { %5100 = vmatprep.subr.bf16.mxu1 %v5763_v7  ;;  %v5812_v7 = vld [vmem:[%s7556_s1 + $0x308] sm:$0xff]  }
  0x38   :  { %5079 = vmatpush3.bf16.msra.mxu0 %v5764_v8  ;;  %v5813_v8 = vld [vmem:[%s7556_s1 + $0x388] sm:$0xff]  }
  0x39   :  { %5080 = vmatprep.subr.bf16.mxu0 %v5766_v10  ;;  %5101 = vmatpush3.bf16.msra.mxu1 %v5765_v9  ;;  %v5814_v9 = vld [vmem:[%s7556_s1 + $0x350] sm:$0xff]  }
  0x3a   :  { %5102 = vmatprep.subr.bf16.mxu1 %v5767_v11  ;;  %v5815_v10 = vld [vmem:[%s7556_s1 + $0x3d0] sm:$0xff]  }
  0x3b   :  { %v5816_v11 = vld [vmem:[%s7556_s1 + $0x310] sm:$0xff]  }
  0x3c   :  { %5081 = vmatpush3.bf16.msra.mxu0 %v5768_v12  ;;  %v5817_v12 = vld [vmem:[%s7556_s1 + $0x390] sm:$0xff]  }
  0x3d   :  { %5082 = vmatprep.subr.bf16.mxu0 %v5770_v14  ;;  %5103 = vmatpush3.bf16.msra.mxu1 %v5769_v13  ;;  %v5818_v13 = vld [vmem:[%s7556_s1 + $0x358] sm:$0xff]  }
  0x3e   :  { %5104 = vmatprep.subr.bf16.mxu1 %v5771_v15  ;;  %v5819_v14 = vld [vmem:[%s7556_s1 + $0x3d8] sm:$0xff]  }
  0x3f   :  { %v5820_v15 = vld [vmem:[%s7556_s1 + $0x318] sm:$0xff]  }
  0x40   :  { %5083 = vmatpush3.bf16.msra.mxu0 %v5772_v16  ;;  %v5821_v16 = vld [vmem:[%s7556_s1 + $0x398] sm:$0xff]  }
  0x41   :  { %5112 = vmatprep.subr.bf16.mxu0 %v5774_v19  ;;  %5105 = vmatpush3.bf16.msra.mxu1 %v5773_v17  ;;  %v5822_v17 = vld [vmem:[%s7556_s1 + $0x360] sm:$0xff]  }
  0x42   :  { %5134 = vmatprep.subr.bf16.mxu1 %v5775_v20  ;;  %v5824_v19 = vld [vmem:[%s7556_s1 + $0x320] sm:$0xff]  }
  0x43   :  { %3574 = vmatmul.mubr.bf16.vlgmr.msra.gmra.mrb[4].mxu0 %v845_v18  ;;  %v5823_v18 = vld [vmem:[%s7556_s1 + $0x3e0] sm:$0xff]  }
  0x44   :  { %5113 = vmatpush3.bf16.msra.mxu0 %v5776_v21  ;;  %3614 = vmatmul.mubr.bf16.vlgmr.msra.gmra.mrb[4].mxu1 %v861_v23  ;;  %v5825_v20 = vld [vmem:[%s7556_s1 + $0x3a0] sm:$0xff]   ;;  %v5826_v21 = vld [vmem:[%s7556_s1 + $0x368] sm:$0xff]  }
  0x45   :  { %5114 = vmatprep.subr.bf16.mxu0 %v5778_v24  ;;  %5135 = vmatpush3.bf16.msra.mxu1 %v5777_v22  ;;  %v5827_v22 = vld [vmem:[%s7556_s1 + $0x3e8] sm:$0xff]  }
  0x46   :  { %5136 = vmatprep.subr.bf16.mxu1 %v5779_v25  ;;  %3653 = vmatprep.mubr.bf16.mxu0 %v901_v56  ;;  %v5828_v23 = vld [vmem:[%s7556_s1 + $0x328] sm:$0xff]   ;;  %v5830_v25 = vld [vmem:[%s7556_s1 + $0x370] sm:$0xff]  }
  0x47   :  { %3693 = vmatprep.mubr.bf16.mxu1 %v911_v60  ;;  %v5829_v24 = vld [vmem:[%s7556_s1 + $0x3a8] sm:$0xff]   ;;  %v5863_v60 = vld [vmem:[%s7556_s1 + $0x470] sm:$0xff]  }
  0x48   :  { %5115 = vmatpush3.bf16.msra.mxu0 %v5780_v26  ;;  %v5831_v26 = vld [vmem:[%s7556_s1 + $0x3f0] sm:$0xff]   ;;  %v5859_v56 = vld [vmem:[%s7556_s1 + $0x468] sm:$0xff]  }
  0x49   :  { %5116 = vmatprep.subr.bf16.mxu0 %v5782_v28  ;;  %5137 = vmatpush3.bf16.msra.mxu1 %v5781_v27  ;;  %v5832_v27 = vld [vmem:[%s7556_s1 + $0x330] sm:$0xff]  }
  0x4a   :  { %5138 = vmatprep.subr.bf16.mxu1 %v5783_v29  ;;  %v5833_v28 = vld [vmem:[%s7556_s1 + $0x3b0] sm:$0xff]   ;;  %v5834_v29 = vld [vmem:[%s7556_s1 + $0x378] sm:$0xff]  }
  0x4c   :  { %5117 = vmatpush3.bf16.msra.mxu0 %v5784_v30  ;;  %v5835_v30 = vld [vmem:[%s7556_s1 + $0x3f8] sm:$0xff]  }
  0x4d   :  { %5118 = vmatprep.subr.bf16.mxu0 %v5786_v32  ;;  %5139 = vmatpush3.bf16.msra.mxu1 %v5785_v31  ;;  %v5836_v31 = vld [vmem:[%s7556_s1 + $0x338] sm:$0xff]  }
  0x4e   :  { %5140 = vmatprep.subr.bf16.mxu1 %v5787_v33  ;;  %v5837_v32 = vld [vmem:[%s7556_s1 + $0x3b8] sm:$0xff]   ;;  %v894_v33 = vrot.slane %v6469_v53, %v6277_v41  ;;  %v5856_v53 = vld [vmem:[%s7556_s1 + $0x4e0] sm:$0xff]  }
  0x50   :  { %5119 = vmatpush3.bf16.msra.mxu0 %v5788_v34  ;;  %v5839_v34 = vld [vmem:[%s7556_s1 + $0x440] sm:$0xff]  }
  0x51   :  { %5120 = vmatprep.subr.bf16.mxu0 %v5790_v36  ;;  %5141 = vmatpush3.bf16.msra.mxu1 %v5789_v35  ;;  %v5840_v35 = vld [vmem:[%s7556_s1 + $0x4c0] sm:$0xff]  }
  0x52   :  { %5142 = vmatprep.subr.bf16.mxu1 %v5791_v37  ;;  %v5841_v36 = vld [vmem:[%s7556_s1 + $0x400] sm:$0xff]  }
  0x53   :  { %v5842_v37 = vld [vmem:[%s7556_s1 + $0x480] sm:$0xff]  }
  0x54   :  { %5121 = vmatpush3.bf16.msra.mxu0 %v5792_v38  ;;  %v910_v38 = vcombine.high %v894_v33, %v894_v33 }
  0x55   :  { %5122 = vmatprep.subr.bf16.mxu0 %v5794_v40  ;;  %5143 = vmatpush3.bf16.msra.mxu1 %v5793_v39  ;;  %v5843_v39 = vld [vmem:[%s7556_s1 + $0x448] sm:$0xff]  }
  0x56   :  { %5144 = vmatprep.subr.bf16.mxu1 %v5795_v42  ;;  %v5844_v40 = vld [vmem:[%s7556_s1 + $0x4c8] sm:$0xff]  }
  0x57   :  { %v5845_v42 = vld [vmem:[%s7556_s1 + $0x408] sm:$0xff]  }
  0x58   :  { %5123 = vmatpush3.bf16.msra.mxu0 %v5796_v43  ;;  %v5846_v43 = vld [vmem:[%s7556_s1 + $0x488] sm:$0xff]  }
  0x59   :  { %5124 = vmatprep.subr.bf16.mxu0 %v5798_v45  ;;  %5145 = vmatpush3.bf16.msra.mxu1 %v5797_v44  ;;  %v5847_v44 = vld [vmem:[%s7556_s1 + $0x450] sm:$0xff]  }
  0x5a   :  { %5146 = vmatprep.subr.bf16.mxu1 %v5799_v47  ;;  %v5848_v45 = vld [vmem:[%s7556_s1 + $0x4d0] sm:$0xff]  }
  0x5b   :  { %v5850_v47 = vld [vmem:[%s7556_s1 + $0x490] sm:$0xff]  }
  0x5c   :  { %5125 = vmatpush3.bf16.msra.mxu0 %v5800_v50  ;;  %v5853_v50 = vld [vmem:[%s7556_s1 + $0x418] sm:$0xff]  }
  0x5d   :  { %5126 = vmatprep.subr.bf16.mxu0 %v5802_v54  ;;  %5147 = vmatpush3.bf16.msra.mxu1 %v5801_v51  ;;  %v5854_v51 = vld [vmem:[%s7556_s1 + $0x498] sm:$0xff]   ;;  %v5857_v54 = vld [vmem:[%s7556_s1 + $0x420] sm:$0xff]  }
  0x5e   :  { %5148 = vmatprep.subr.bf16.mxu1 %v5803_v55  ;;  %v5858_v55 = vld [vmem:[%s7556_s1 + $0x4a0] sm:$0xff]  }
  0x60   :  { %5127 = vmatpush3.bf16.msra.mxu0 %v5804_v58  ;;  %v5861_v58 = vld [vmem:[%s7556_s1 + $0x428] sm:$0xff]  }
  0x61   :  { %5156 = vmatprep.subr.bf16.mxu0 %v5806_v62  ;;  %5149 = vmatpush3.bf16.msra.mxu1 %v5805_v59  ;;  %v5862_v59 = vld [vmem:[%s7556_s1 + $0x4a8] sm:$0xff]   ;;  %v5864_v62 = vld [vmem:[%s7556_s1 + $0x4f0] sm:$0xff]  }
  0x62   :  { %5178 = vmatprep.subr.bf16.mxu1 %v5807_v63 }
  0x63   :  { %3654 = vmatmul.mubr.bf16.vlgmr.msra.gmra.mrb[8].mxu0 %v887_v61  ;;  %v30_v61 = vld [vmem:[%s7555_s0 + $0x10] sm:$0xff] }
  0x64   :  { %5157 = vmatpush3.bf16.msra.mxu0 %v5808_v1  ;;  %3733 = vmatprep.mubr.bf16.mxu0 %v908_v0  ;;  %v920_v63 = vrot.slane %v30_v61, %v6277_v41  ;;  %v913_v0 = vcombine.high %v30_v61, %v30_v61  ;;  %v5865_v1 = vld [vmem:[%s7556_s1 + $0x430] sm:$0xff]  }
  0x65   :  { %3694 = vmatmul.mubr.bf16.vlgmr.msra.gmra.mrb[8].mxu1 %v909_v3  ;;  %5158 = vmatprep.subr.bf16.mxu0 %v5810_v4  ;;  %v5914_v61 = vld [vmem:[%s7556_s1 + $0x610] sm:$0xff]  }
  0x66   :  { %5179 = vmatpush3.bf16.msra.mxu1 %v5809_v2  ;;  %3773 = vmatprep.mubr.bf16.mxu1 %v912_v6  ;;  %v5866_v2 = vld [vmem:[%s7556_s1 + $0x4b0] sm:$0xff]   ;;  %v928_v3 = vcombine.high %v920_v63, %v920_v63  ;;  %v6675_v4 = vrot.slane %v913_v0, %v6277_v41  ;;  %v5868_v6 = vld [vmem:[%s7556_s1 + $0x4f8] sm:$0xff]  }
  0x67   :  { %5180 = vmatprep.subr.bf16.mxu1 %v5811_v5  ;;  %v5867_v5 = vld [vmem:[%s7556_s1 + $0x478] sm:$0xff]  }
  0x68   :  { %5159 = vmatpush3.bf16.msra.mxu0 %v5812_v7  ;;  %v950_v7 = vrot.slane %v928_v3, %v6277_v41  ;;  %v5917_v0 = vld [vmem:[%s7556_s1 + $0x6d8] sm:$0xff]   ;;  %v5920_v3 = vld [vmem:[%s7556_s1 + $0x660] sm:$0xff]  }
  0x69   :  { %5160 = vmatprep.subr.bf16.mxu0 %v5814_v9  ;;  %v5869_v9 = vld [vmem:[%s7556_s1 + $0x438] sm:$0xff]  }
  0x6a   :  { %5181 = vmatpush3.bf16.msra.mxu1 %v5813_v8  ;;  %v929_v8 = vcombine.high %v6675_v4, %v6675_v4 }
  0x6b   :  { %5182 = vmatprep.subr.bf16.mxu1 %v5815_v10  ;;  %v5870_v10 = vld [vmem:[%s7556_s1 + $0x4b8] sm:$0xff]  }
  0x6c   :  { %5161 = vmatpush3.bf16.msra.mxu0 %v5816_v11  ;;  %v960_v11 = vcombine.high %v950_v7, %v950_v7 }
  0x6d   :  { %5162 = vmatprep.subr.bf16.mxu0 %v5818_v13  ;;  %v5871_v13 = vld [vmem:[%s7556_s1 + $0x540] sm:$0xff]  }
  0x6e   :  { %5183 = vmatpush3.bf16.msra.mxu1 %v5817_v12  ;;  %v936_v12 = vrot.slane %v920_v63, %v6277_v41  ;;  %v5916_v63 = vld [vmem:[%s7556_s1 + $0x658] sm:$0xff]  }
  0x6f   :  { %5184 = vmatprep.subr.bf16.mxu1 %v5819_v14  ;;  %v5872_v14 = vld [vmem:[%s7556_s1 + $0x5c0] sm:$0xff]  }
  0x70   :  { %5163 = vmatpush3.bf16.msra.mxu0 %v5820_v15  ;;  %v957_v15 = vrot.slane %v929_v8, %v6277_v41  ;;  %v5925_v8 = vld [vmem:[%s7556_s1 + $0x6e8] sm:$0xff]  }
  0x71   :  { %5164 = vmatprep.subr.bf16.mxu0 %v5822_v17  ;;  %v5874_v17 = vld [vmem:[%s7556_s1 + $0x580] sm:$0xff]  }
  0x72   :  { %5185 = vmatpush3.bf16.msra.mxu1 %v5821_v16  ;;  %v5873_v16 = vld [vmem:[%s7556_s1 + $0x500] sm:$0xff]  }
  0x73   :  { %5186 = vmatprep.subr.bf16.mxu1 %v5823_v18  ;;  %v958_v18 = vcombine.high %v936_v12, %v936_v12 }
  0x74   :  { %5165 = vmatpush3.bf16.msra.mxu0 %v5824_v19  ;;  %v5875_v19 = vld [vmem:[%s7556_s1 + $0x548] sm:$0xff]  }
  0x75   :  { %5166 = vmatprep.subr.bf16.mxu0 %v5826_v21  ;;  %v961_v21 = vcombine.high %v957_v15, %v957_v15 }
  0x76   :  { %5187 = vmatpush3.bf16.msra.mxu1 %v5825_v20  ;;  %v5876_v20 = vld [vmem:[%s7556_s1 + $0x5c8] sm:$0xff]  }
  0x77   :  { %5188 = vmatprep.subr.bf16.mxu1 %v5827_v22  ;;  %v5877_v22 = vld [vmem:[%s7556_s1 + $0x508] sm:$0xff]  }
  0x78   :  { %5167 = vmatpush3.bf16.msra.mxu0 %v5828_v23  ;;  %v5878_v23 = vld [vmem:[%s7556_s1 + $0x588] sm:$0xff]  }
  0x79   :  { %5168 = vmatprep.subr.bf16.mxu0 %v5830_v25  ;;  %v5880_v25 = vld [vmem:[%s7556_s1 + $0x5d0] sm:$0xff]  }
  0x7a   :  { %5189 = vmatpush3.bf16.msra.mxu1 %v5829_v24  ;;  %v5879_v24 = vld [vmem:[%s7556_s1 + $0x550] sm:$0xff]  }
  0x7b   :  { %5190 = vmatprep.subr.bf16.mxu1 %v5831_v26  ;;  %v5881_v26 = vld [vmem:[%s7556_s1 + $0x510] sm:$0xff]  }
  0x7c   :  { %5169 = vmatpush3.bf16.msra.mxu0 %v5832_v27  ;;  %v5882_v27 = vld [vmem:[%s7556_s1 + $0x590] sm:$0xff]  }
  0x7d   :  { %5170 = vmatprep.subr.bf16.mxu0 %v5834_v29  ;;  %v5884_v29 = vld [vmem:[%s7556_s1 + $0x5d8] sm:$0xff]  }
  0x7e   :  { %5191 = vmatpush3.bf16.msra.mxu1 %v5833_v28  ;;  %v5883_v28 = vld [vmem:[%s7556_s1 + $0x558] sm:$0xff]  }
  0x7f   :  { %5192 = vmatprep.subr.bf16.mxu1 %v5835_v30  ;;  %v5885_v30 = vld [vmem:[%s7556_s1 + $0x518] sm:$0xff]  }
  0x80   :  { %5171 = vmatpush3.bf16.msra.mxu0 %v5836_v31  ;;  %v5886_v31 = vld [vmem:[%s7556_s1 + $0x598] sm:$0xff]  }
  0x81   :  { %5200 = vmatprep.subr.bf16.mxu0 %v5839_v34  ;;  %v5889_v34 = vld [vmem:[%s7556_s1 + $0x520] sm:$0xff]  }
  0x82   :  { %5193 = vmatpush3.bf16.msra.mxu1 %v5837_v32  ;;  %v5887_v32 = vld [vmem:[%s7556_s1 + $0x560] sm:$0xff]  }
  0x83   :  { %3734 = vmatmul.mubr.bf16.vlgmr.msra.gmra.mrb[12].mxu0 %v894_v33  ;;  %5222 = vmatprep.subr.bf16.mxu1 %v5840_v35  ;;  %v5888_v33 = vld [vmem:[%s7556_s1 + $0x5e0] sm:$0xff]  }
  0x84   :  { %5201 = vmatpush3.bf16.msra.mxu0 %v5841_v36  ;;  %3813 = vmatprep.mubr.bf16.mxu0 %v950_v7  ;;  %v5890_v35 = vld [vmem:[%s7556_s1 + $0x5a0] sm:$0xff]   ;;  %v5891_v36 = vld [vmem:[%s7556_s1 + $0x568] sm:$0xff]  }
  0x85   :  { %3774 = vmatmul.mubr.bf16.vlgmr.msra.gmra.mrb[12].mxu1 %v910_v38  ;;  %5202 = vmatprep.subr.bf16.mxu0 %v5843_v39  ;;  %v5893_v38 = vld [vmem:[%s7556_s1 + $0x528] sm:$0xff]  }
  0x86   :  { %5223 = vmatpush3.bf16.msra.mxu1 %v5842_v37  ;;  %3853 = vmatprep.mubr.bf16.mxu1 %v960_v11  ;;  %v5892_v37 = vld [vmem:[%s7556_s1 + $0x5e8] sm:$0xff]   ;;  %v5928_v11 = vld [vmem:[%s7556_s1 + $0x670] sm:$0xff]  }
  0x87   :  { %5224 = vmatprep.subr.bf16.mxu1 %v5844_v40  ;;  %v5894_v39 = vld [vmem:[%s7556_s1 + $0x5a8] sm:$0xff]   ;;  %v5895_v40 = vld [vmem:[%s7556_s1 + $0x570] sm:$0xff]  }
  0x88   :  { %5203 = vmatpush3.bf16.msra.mxu0 %v5845_v42  ;;  %v5896_v42 = vld [vmem:[%s7556_s1 + $0x5f0] sm:$0xff]   ;;  %v5924_v7 = vld [vmem:[%s7556_s1 + $0x668] sm:$0xff]  }
  0x89   :  { %5204 = vmatprep.subr.bf16.mxu0 %v5847_v44  ;;  %v5898_v44 = vld [vmem:[%s7556_s1 + $0x5b0] sm:$0xff]  }
  0x8a   :  { %5225 = vmatpush3.bf16.msra.mxu1 %v5846_v43  ;;  %v5897_v43 = vld [vmem:[%s7556_s1 + $0x530] sm:$0xff]  }
  0x8b   :  { %5226 = vmatprep.subr.bf16.mxu1 %v5848_v45  ;;  %v5899_v45 = vld [vmem:[%s7556_s1 + $0x578] sm:$0xff]  }
  0x8c   :  { %5205 = vmatpush3.bf16.msra.mxu0 %v5849_v46  ;;  %v5900_v46 = vld [vmem:[%s7556_s1 + $0x5f8] sm:$0xff]  }
  0x8d   :  { %5206 = vmatprep.subr.bf16.mxu0 %v5851_v48  ;;  %v5902_v48 = vld [vmem:[%s7556_s1 + $0x5b8] sm:$0xff]  }
  0x8e   :  { %5227 = vmatpush3.bf16.msra.mxu1 %v5850_v47  ;;  %v5901_v47 = vld [vmem:[%s7556_s1 + $0x538] sm:$0xff]  }
  0x8f   :  { %5228 = vmatprep.subr.bf16.mxu1 %v5852_v49  ;;  %v943_v49 = vrot.slane %v6675_v4, %v6277_v41  ;;  %v5921_v4 = vld [vmem:[%s7556_s1 + $0x6e0] sm:$0xff]  }
  0x90   :  { %5207 = vmatpush3.bf16.msra.mxu0 %v5853_v50  ;;  %v5904_v50 = vld [vmem:[%s7556_s1 + $0x640] sm:$0xff]  }
  0x91   :  { %5208 = vmatprep.subr.bf16.mxu0 %v5855_v52  ;;  %v5906_v52 = vld [vmem:[%s7556_s1 + $0x600] sm:$0xff]  }
  0x92   :  { %5229 = vmatpush3.bf16.msra.mxu1 %v5854_v51  ;;  %v5905_v51 = vld [vmem:[%s7556_s1 + $0x6c0] sm:$0xff]  }
  0x93   :  { %5230 = vmatprep.subr.bf16.mxu1 %v5856_v53  ;;  %v5907_v53 = vld [vmem:[%s7556_s1 + $0x680] sm:$0xff]  }
  0x94   :  { %5209 = vmatpush3.bf16.msra.mxu0 %v5857_v54  ;;  %v959_v54 = vcombine.high %v943_v49, %v943_v49 }
  0x95   :  { %5210 = vmatprep.subr.bf16.mxu0 %v5859_v56  ;;  %v5909_v56 = vld [vmem:[%s7556_s1 + $0x6c8] sm:$0xff]  }
  0x96   :  { %5231 = vmatpush3.bf16.msra.mxu1 %v5858_v55  ;;  %v5908_v55 = vld [vmem:[%s7556_s1 + $0x648] sm:$0xff]  }
  0x97   :  { %5232 = vmatprep.subr.bf16.mxu1 %v5860_v57  ;;  %v5910_v57 = vld [vmem:[%s7556_s1 + $0x608] sm:$0xff]  }
  0x98   :  { %5211 = vmatpush3.bf16.msra.mxu0 %v5861_v58  ;;  %v5911_v58 = vld [vmem:[%s7556_s1 + $0x688] sm:$0xff]  }
  0x99   :  { %5212 = vmatprep.subr.bf16.mxu0 %v5863_v60  ;;  %v5913_v60 = vld [vmem:[%s7556_s1 + $0x6d0] sm:$0xff]  }
  0x9a   :  { %5233 = vmatpush3.bf16.msra.mxu1 %v5862_v59  ;;  %v5912_v59 = vld [vmem:[%s7556_s1 + $0x650] sm:$0xff]  }
  0x9b   :  { %5234 = vmatprep.subr.bf16.mxu1 %v5864_v62  ;;  %v5915_v62 = vld [vmem:[%s7556_s1 + $0x690] sm:$0xff]  }
  0x9c   :  { %5213 = vmatpush3.bf16.msra.mxu0 %v5865_v1  ;;  %v5918_v1 = vld [vmem:[%s7556_s1 + $0x618] sm:$0xff]  }
  0x9d   :  { %5214 = vmatprep.subr.bf16.mxu0 %v5867_v5  ;;  %v5922_v5 = vld [vmem:[%s7556_s1 + $0x620] sm:$0xff]  }
  0x9e   :  { %5235 = vmatpush3.bf16.msra.mxu1 %v5866_v2  ;;  %v5919_v2 = vld [vmem:[%s7556_s1 + $0x698] sm:$0xff]  }
  0x9f   :  { %5236 = vmatprep.subr.bf16.mxu1 %v5868_v6  ;;  %v5923_v6 = vld [vmem:[%s7556_s1 + $0x6a0] sm:$0xff]  }
  0xa0   :  { %5215 = vmatpush3.bf16.msra.mxu0 %v5869_v9  ;;  %v5926_v9 = vld [vmem:[%s7556_s1 + $0x628] sm:$0xff]  }
  0xa1   :  { %5244 = vmatprep.subr.bf16.mxu0 %v5871_v13  ;;  %v5929_v13 = vld [vmem:[%s7556_s1 + $0x6f0] sm:$0xff]  }
  0xa2   :  { %5237 = vmatpush3.bf16.msra.mxu1 %v5870_v10  ;;  %v5927_v10 = vld [vmem:[%s7556_s1 + $0x6a8] sm:$0xff]  }
  0xa3   :  { %3814 = vmatmul.mubr.bf16.vlgmr.msra.gmra.mrb[16].mxu0 %v936_v12  ;;  %5266 = vmatprep.subr.bf16.mxu1 %v5872_v14  ;;  %v31_v12 = vld [vmem:[%s7555_s0 + $0x18] sm:$0xff] }
  0xa4   :  { %5245 = vmatpush3.bf16.msra.mxu0 %v5873_v16  ;;  %3893 = vmatprep.mubr.bf16.mxu0 %v957_v15  ;;  %v969_v14 = vrot.slane %v31_v12, %v6277_v41  ;;  %v962_v15 = vcombine.high %v31_v12, %v31_v12  ;;  %v5930_v16 = vld [vmem:[%s7556_s1 + $0x630] sm:$0xff]   ;;  %v5967_v12 = vld [vmem:[%s7556_s1 + $0x7b8] sm:$0xff]  }
  0xa5   :  { %3854 = vmatmul.mubr.bf16.vlgmr.msra.gmra.mrb[16].mxu1 %v958_v18  ;;  %5246 = vmatprep.subr.bf16.mxu0 %v5875_v19 }
  0xa6   :  { %5267 = vmatpush3.bf16.msra.mxu1 %v5874_v17  ;;  %3933 = vmatprep.mubr.bf16.mxu1 %v961_v21  ;;  %v5932_v17 = vld [vmem:[%s7556_s1 + $0x678] sm:$0xff]   ;;  %v977_v18 = vcombine.high %v969_v14, %v969_v14  ;;  %v6881_v19 = vrot.slane %v962_v15, %v6277_v41  ;;  %v5970_v15 = vld [vmem:[%s7556_s1 + $0x8c0] sm:$0xff]  }
  0xa7   :  { %5268 = vmatprep.subr.bf16.mxu1 %v5876_v20  ;;  %v5931_v20 = vld [vmem:[%s7556_s1 + $0x6b0] sm:$0xff]   ;;  %v5933_v21 = vld [vmem:[%s7556_s1 + $0x6f8] sm:$0xff]  }
  0xa8   :  { %5247 = vmatpush3.bf16.msra.mxu0 %v5877_v22  ;;  %v999_v22 = vrot.slane %v977_v18, %v6277_v41 }
  0xa9   :  { %5248 = vmatprep.subr.bf16.mxu0 %v5879_v24  ;;  %v5934_v24 = vld [vmem:[%s7556_s1 + $0x638] sm:$0xff]  }
  0xaa   :  { %5269 = vmatpush3.bf16.msra.mxu1 %v5878_v23  ;;  %v978_v23 = vcombine.high %v6881_v19, %v6881_v19 }
  0xab   :  { %5270 = vmatprep.subr.bf16.mxu1 %v5880_v25  ;;  %v1009_v25 = vcombine.high %v999_v22, %v999_v22 }
  0xac   :  { %5249 = vmatpush3.bf16.msra.mxu0 %v5881_v26  ;;  %v985_v26 = vrot.slane %v969_v14, %v6277_v41  ;;  %v5969_v14 = vld [vmem:[%s7556_s1 + $0x840] sm:$0xff]  }
  0xad   :  { %5250 = vmatprep.subr.bf16.mxu0 %v5883_v28  ;;  %v5935_v28 = vld [vmem:[%s7556_s1 + $0x6b8] sm:$0xff]  }
  0xae   :  { %5271 = vmatpush3.bf16.msra.mxu1 %v5882_v27  ;;  %v5936_v27 = vld [vmem:[%s7556_s1 + $0x740] sm:$0xff]  }
  0xaf   :  { %5272 = vmatprep.subr.bf16.mxu1 %v5884_v29  ;;  %v1006_v29 = vrot.slane %v978_v23, %v6277_v41  ;;  %v5977_v23 = vld [vmem:[%s7556_s1 + $0x850] sm:$0xff]  }
  0xb0   :  { %5251 = vmatpush3.bf16.msra.mxu0 %v5885_v30  ;;  %v5937_v30 = vld [vmem:[%s7556_s1 + $0x7c0] sm:$0xff]  }
  0xb1   :  { %5252 = vmatprep.subr.bf16.mxu0 %v5887_v32  ;;  %v1007_v32 = vcombine.high %v985_v26, %v985_v26 }
  0xb2   :  { %5273 = vmatpush3.bf16.msra.mxu1 %v5886_v31  ;;  %v5938_v31 = vld [vmem:[%s7556_s1 + $0x700] sm:$0xff]  }
  0xb3   :  { %5274 = vmatprep.subr.bf16.mxu1 %v5888_v33  ;;  %v5940_v33 = vld [vmem:[%s7556_s1 + $0x748] sm:$0xff]  }
  0xb4   :  { %5253 = vmatpush3.bf16.msra.mxu0 %v5889_v34  ;;  %v5939_v34 = vld [vmem:[%s7556_s1 + $0x780] sm:$0xff]  }
  0xb5   :  { %5254 = vmatprep.subr.bf16.mxu0 %v5891_v36  ;;  %v5941_v36 = vld [vmem:[%s7556_s1 + $0x7c8] sm:$0xff]  }
  0xb6   :  { %5275 = vmatpush3.bf16.msra.mxu1 %v5890_v35  ;;  %v1010_v35 = vcombine.high %v1006_v29, %v1006_v29 }
  0xb7   :  { %5276 = vmatprep.subr.bf16.mxu1 %v5892_v37  ;;  %v5942_v37 = vld [vmem:[%s7556_s1 + $0x708] sm:$0xff]  }
  0xb8   :  { %5255 = vmatpush3.bf16.msra.mxu0 %v5893_v38  ;;  %v5944_v38 = vld [vmem:[%s7556_s1 + $0x750] sm:$0xff]  }
  0xb9   :  { %5256 = vmatprep.subr.bf16.mxu0 %v5895_v40  ;;  %v5945_v40 = vld [vmem:[%s7556_s1 + $0x7d0] sm:$0xff]  }
  0xba   :  { %5277 = vmatpush3.bf16.msra.mxu1 %v5894_v39  ;;  %v5943_v39 = vld [vmem:[%s7556_s1 + $0x788] sm:$0xff]  }
  0xbb   :  { %5278 = vmatprep.subr.bf16.mxu1 %v5896_v42  ;;  %v5946_v42 = vld [vmem:[%s7556_s1 + $0x710] sm:$0xff]  }
  0xbc   :  { %5257 = vmatpush3.bf16.msra.mxu0 %v5897_v43  ;;  %v5948_v43 = vld [vmem:[%s7556_s1 + $0x758] sm:$0xff]  }
  0xbd   :  { %5258 = vmatprep.subr.bf16.mxu0 %v5899_v45  ;;  %v5949_v45 = vld [vmem:[%s7556_s1 + $0x7d8] sm:$0xff]  }
  0xbe   :  { %5279 = vmatpush3.bf16.msra.mxu1 %v5898_v44  ;;  %v5947_v44 = vld [vmem:[%s7556_s1 + $0x790] sm:$0xff]  }
  0xbf   :  { %5280 = vmatprep.subr.bf16.mxu1 %v5900_v46  ;;  %v5950_v46 = vld [vmem:[%s7556_s1 + $0x718] sm:$0xff]  }
  0xc0   :  { %5259 = vmatpush3.bf16.msra.mxu0 %v5901_v47  ;;  %v5951_v47 = vld [vmem:[%s7556_s1 + $0x798] sm:$0xff]  }
  0xc1   :  { %5288 = vmatprep.subr.bf16.mxu0 %v5904_v50  ;;  %v5954_v50 = vld [vmem:[%s7556_s1 + $0x720] sm:$0xff]  }
  0xc2   :  { %5281 = vmatpush3.bf16.msra.mxu1 %v5902_v48  ;;  %v5952_v48 = vld [vmem:[%s7556_s1 + $0x760] sm:$0xff]  }
  0xc3   :  { %3894 = vmatmul.mubr.bf16.vlgmr.msra.gmra.mrb[20].mxu0 %v943_v49  ;;  %5310 = vmatprep.subr.bf16.mxu1 %v5905_v51  ;;  %v5953_v49 = vld [vmem:[%s7556_s1 + $0x7e0] sm:$0xff]  }
  0xc4   :  { %5289 = vmatpush3.bf16.msra.mxu0 %v5906_v52  ;;  %3973 = vmatprep.mubr.bf16.mxu0 %v999_v22  ;;  %v5955_v51 = vld [vmem:[%s7556_s1 + $0x7a0] sm:$0xff]   ;;  %v5956_v52 = vld [vmem:[%s7556_s1 + $0x768] sm:$0xff]  }
  0xc5   :  { %3934 = vmatmul.mubr.bf16.vlgmr.msra.gmra.mrb[20].mxu1 %v959_v54  ;;  %5290 = vmatprep.subr.bf16.mxu0 %v5908_v55  ;;  %v5958_v54 = vld [vmem:[%s7556_s1 + $0x728] sm:$0xff]  }
  0xc6   :  { %5311 = vmatpush3.bf16.msra.mxu1 %v5907_v53  ;;  %4013 = vmatprep.mubr.bf16.mxu1 %v1009_v25  ;;  %v5957_v53 = vld [vmem:[%s7556_s1 + $0x7e8] sm:$0xff]   ;;  %v5979_v25 = vld [vmem:[%s7556_s1 + $0x810] sm:$0xff]  }
  0xc7   :  { %5312 = vmatprep.subr.bf16.mxu1 %v5909_v56  ;;  %v5959_v55 = vld [vmem:[%s7556_s1 + $0x7a8] sm:$0xff]   ;;  %v4637_v56 = vld [vmem:[%s7557_s2] ss:$0 sm:$0xff] }
  0xc8   :  { %5291 = vmatpush3.bf16.msra.mxu0 %v5910_v57  ;;  %v5960_v57 = vld [vmem:[%s7556_s1 + $0x770] sm:$0xff]   ;;  %v5976_v22 = vld [vmem:[%s7556_s1 + $0x888] sm:$0xff]  }
  0xc9   :  { %5292 = vmatprep.subr.bf16.mxu0 %v5912_v59  ;;  %v5961_v59 = vld [vmem:[%s7556_s1 + $0x7f0] sm:$0xff]  }
  0xca   :  { %5313 = vmatpush3.bf16.msra.mxu1 %v5911_v58 }
  0xcb   :  { %5314 = vmatprep.subr.bf16.mxu1 %v5913_v60 }
  0xcc   :  { %5293 = vmatpush3.bf16.msra.mxu0 %v5914_v61  ;;  %v5962_v61 = vld [vmem:[%s7556_s1 + $0x730] sm:$0xff]  }
  0xcd   :  { %5294 = vmatprep.subr.bf16.mxu0 %v5916_v63 }
  0xce   :  { %5315 = vmatpush3.bf16.msra.mxu1 %v5915_v62 }
  0xcf   :  { %5316 = vmatprep.subr.bf16.mxu1 %v5917_v0 }
  0xd0   :  { %5295 = vmatpush3.bf16.msra.mxu0 %v5918_v1  ;;  %v5963_v1 = vld [vmem:[%s7556_s1 + $0x7b0] sm:$0xff]  }
  0xd1   :  { %5296 = vmatprep.subr.bf16.mxu0 %v5920_v3 }
  0xd2   :  { %5317 = vmatpush3.bf16.msra.mxu1 %v5919_v2  ;;  %v5964_v2 = vld [vmem:[%s7556_s1 + $0x778] sm:$0xff]  }
  0xd3   :  { %5318 = vmatprep.subr.bf16.mxu1 %v5921_v4 }
  0xd4   :  { %5297 = vmatpush3.bf16.msra.mxu0 %v5922_v5 }
  0xd5   :  { %5298 = vmatprep.subr.bf16.mxu0 %v5924_v7 }
  0xd6   :  { %5319 = vmatpush3.bf16.msra.mxu1 %v5923_v6 }
  0xd7   :  { %5320 = vmatprep.subr.bf16.mxu1 %v5925_v8  ;;  %v5965_v8 = vld [vmem:[%s7556_s1 + $0x7f8] sm:$0xff]  }
  0xd8   :  { %5299 = vmatpush3.bf16.msra.mxu0 %v5926_v9 }
  0xd9   :  { %5300 = vmatprep.subr.bf16.mxu0 %v5928_v11 }
  0xda   :  { %5321 = vmatpush3.bf16.msra.mxu1 %v5927_v10  ;;  %v5966_v10 = vld [vmem:[%s7556_s1 + $0x738] sm:$0xff]  }
  0xdb   :  { %5322 = vmatprep.subr.bf16.mxu1 %v5929_v13  ;;  %v992_v13 = vrot.slane %v6881_v19, %v6277_v41  ;;  %v5973_v19 = vld [vmem:[%s7556_s1 + $0x848] sm:$0xff]  }
  0xdc   :  { %5301 = vmatpush3.bf16.msra.mxu0 %v5930_v16  ;;  %v5971_v16 = vld [vmem:[%s7556_s1 + $0x800] sm:$0xff]  }
  0xdd   :  { %5302 = vmatprep.subr.bf16.mxu0 %v5932_v17  ;;  %v5972_v17 = vld [vmem:[%s7556_s1 + $0x880] sm:$0xff]   ;;  %v1008_v18 = vcombine.high %v992_v13, %v992_v13 }
  0xde   :  { %5323 = vmatpush3.bf16.msra.mxu1 %v5931_v20  ;;  %v5974_v20 = vld [vmem:[%s7556_s1 + $0x8c8] sm:$0xff]  }
  0xdf   :  { %5324 = vmatprep.subr.bf16.mxu1 %v5933_v21  ;;  %v5975_v21 = vld [vmem:[%s7556_s1 + $0x808] sm:$0xff]  }
  0xe0   :  { %5303 = vmatpush3.bf16.msra.mxu0 %v5934_v24  ;;  %v5978_v24 = vld [vmem:[%s7556_s1 + $0x8d0] sm:$0xff]  }
  0xe1   :  { %5332 = vmatprep.subr.bf16.mxu0 %v5936_v27  ;;  %v5981_v27 = vld [vmem:[%s7556_s1 + $0x858] sm:$0xff]  }
  0xe2   :  { %5325 = vmatpush3.bf16.msra.mxu1 %v5935_v28  ;;  %v5982_v28 = vld [vmem:[%s7556_s1 + $0x8d8] sm:$0xff]  }
  0xe3   :  { %3974 = vmatmul.mubr.bf16.vlgmr.msra.gmra.mrb[24].mxu0 %v985_v26  ;;  %5354 = vmatprep.subr.bf16.mxu1 %v5937_v30  ;;  %v5980_v26 = vld [vmem:[%s7556_s1 + $0x890] sm:$0xff]   ;;  %v5984_v30 = vld [vmem:[%s7556_s1 + $0x898] sm:$0xff]  }
  0xe4   :  { %5333 = vmatpush3.bf16.msra.mxu0 %v5938_v31  ;;  %4053 = vmatprep.mubr.bf16.mxu0 %v1006_v29  ;;  %v5983_v29 = vld [vmem:[%s7556_s1 + $0x818] sm:$0xff]   ;;  %v5985_v31 = vld [vmem:[%s7556_s1 + $0x860] sm:$0xff]  }
  0xe5   :  { %4014 = vmatmul.mubr.bf16.vlgmr.msra.gmra.mrb[24].mxu1 %v1007_v32  ;;  %5334 = vmatprep.subr.bf16.mxu0 %v5940_v33  ;;  %v5986_v32 = vld [vmem:[%s7556_s1 + $0x8e0] sm:$0xff]  }
  0xe6   :  { %5355 = vmatpush3.bf16.msra.mxu1 %v5939_v34  ;;  %4093 = vmatprep.mubr.bf16.mxu1 %v1010_v35  ;;  %v5987_v33 = vld [vmem:[%s7556_s1 + $0x820] sm:$0xff]   ;;  %v5989_v35 = vld [vmem:[%s7556_s1 + $0x868] sm:$0xff]  }
  0xe7   :  { %5356 = vmatprep.subr.bf16.mxu1 %v5941_v36  ;;  %v5988_v34 = vld [vmem:[%s7556_s1 + $0x8a0] sm:$0xff]   ;;  %v5990_v36 = vld [vmem:[%s7556_s1 + $0x8e8] sm:$0xff]  }
  0xe8   :  { %5335 = vmatpush3.bf16.msra.mxu0 %v5942_v37  ;;  %v5991_v37 = vld [vmem:[%s7556_s1 + $0x828] sm:$0xff]  }
  0xe9   :  { %5336 = vmatprep.subr.bf16.mxu0 %v5944_v38  ;;  %v5992_v38 = vld [vmem:[%s7556_s1 + $0x8a8] sm:$0xff]  }
  0xea   :  { %5357 = vmatpush3.bf16.msra.mxu1 %v5943_v39  ;;  %v5993_v39 = vld [vmem:[%s7556_s1 + $0x870] sm:$0xff]  }
  0xeb   :  { %5358 = vmatprep.subr.bf16.mxu1 %v5945_v40  ;;  %v5994_v40 = vld [vmem:[%s7556_s1 + $0x8f0] sm:$0xff]  }
  0xec   :  { %5337 = vmatpush3.bf16.msra.mxu0 %v5946_v42 }
  0xed   :  { %5338 = vmatprep.subr.bf16.mxu0 %v5948_v43  ;;  %v5995_v43 = vld [vmem:[%s7556_s1 + $0x830] sm:$0xff]  }
  0xee   :  { %5359 = vmatpush3.bf16.msra.mxu1 %v5947_v44 }
  0xef   :  { %5360 = vmatprep.subr.bf16.mxu1 %v5949_v45  ;;  %v32_v45 = vld [vmem:[%s7555_s0 + $0x20] sm:$0xff] }
  0xf0   :  { %5339 = vmatpush3.bf16.msra.mxu0 %v5950_v46 }
  0xf1   :  { %5340 = vmatprep.subr.bf16.mxu0 %v5952_v48 }
  0xf2   :  { %5361 = vmatpush3.bf16.msra.mxu1 %v5951_v47 }
  0xf3   :  { %5362 = vmatprep.subr.bf16.mxu1 %v5953_v49  ;;  %v5996_v49 = vld [vmem:[%s7556_s1 + $0x8b0] sm:$0xff]  }
  0xf4   :  { %5341 = vmatpush3.bf16.msra.mxu0 %v5954_v50  ;;  %v5997_v50 = vld [vmem:[%s7556_s1 + $0x878] sm:$0xff]  }
  0xf5   :  { %5342 = vmatprep.subr.bf16.mxu0 %v5956_v52  ;;  %v1011_v52 = vcombine.high %v32_v45, %v32_v45 }
  0xf6   :  { %5363 = vmatpush3.bf16.msra.mxu1 %v5955_v51  ;;  %v5040_v58 = vpop.f32.mrb[0].mxu0  ;;  %v1018_v51 = vrot.slane %v32_v45, %v6277_v41 }
  0xf7   :  { %v5041_v60 = vpop.f32.mrb[1].mxu0  ;;  %5364 = vmatprep.subr.bf16.mxu1 %v5957_v53  ;;  %v5062_v62 = vpop.f32.mrb[0].mxu1 }
  0xf8   :  { %v5042_v63 = vadd.f32 %v5041_v60, %v5040_v58  ;;  %v5043_v0 = vpop.f32.mrb[2].mxu0  ;;  %5343 = vmatpush3.bf16.msra.mxu0 %v5958_v54  ;;  %v5063_v3 = vpop.f32.mrb[1].mxu1  ;;  %v5998_v58 = vld [vmem:[%s7556_s1 + $0x8f8] sm:$0xff]  }
  0xf9   :  { %v5044_v4 = vpop.f32.mrb[3].mxu0  ;;  %5344 = vmatprep.subr.bf16.mxu0 %v5960_v57  ;;  %v5064_v6 = vadd.f32 %v5063_v3, %v5062_v62  ;;  %v5065_v7 = vpop.f32.mrb[2].mxu1  ;;  %v7102_v62 = vrot.slane %v1011_v52, %v6277_v41  ;;  %v6000_v0 = vld [vmem:[%s7556_s1 + $0x8b8] sm:$0xff]   ;;  %v6001_v3 = vld [vmem:[%s7556_s1 + $0x940] sm:$0xff]  }
  0xfa   :  { %v3496_v5 = vadd.f32 %v5042_v63, %v4637_v56  ;;  %5365 = vmatpush3.bf16.msra.mxu1 %v5959_v55  ;;  %v5066_v9 = vpop.f32.mrb[3].mxu1  ;;  %v6003_v7 = vld [vmem:[%s7556_s1 + $0x900] sm:$0xff]   ;;  %v6032_v52 = vld [vmem:[%s7556_s1 + $0x9b8] sm:$0xff]  }
  0xfb   :  { %5366 = vmatprep.subr.bf16.mxu1 %v5961_v59  ;;  %v1026_v59 = vcombine.high %v1018_v51, %v1018_v51  ;;  %v1027_v4 = vcombine.high %v7102_v62, %v7102_v62  ;;  %v6004_v9 = vld [vmem:[%s7556_s1 + $0x980] sm:$0xff]  }
  0xfc   :  { %v6996_v11 = vadd.f32 %v5064_v6, %v3496_v5  ;;  %5345 = vmatpush3.bf16.msra.mxu0 %v5962_v61  ;;  %v5999_v61 = vld [vmem:[%s7556_s1 + $0x838] sm:$0xff]   ;;  %v6002_v6 = vld [vmem:[%s7556_s1 + $0x9c0] sm:$0xff]  }
  0xfd   :  { %5346 = vmatprep.subr.bf16.mxu0 %v5964_v2  ;;  %v1034_v2 = vrot.slane %v1018_v51, %v6277_v41 }
  0xfe   :  { %5367 = vmatpush3.bf16.msra.mxu1 %v5963_v1  ;;  %v1048_v1 = vrot.slane %v1026_v59, %v6277_v41  ;;  %v6038_v59 = vld [vmem:[%s7556_s1 + $0xa48] sm:$0xff]  }
  0xff   :  { %5368 = vmatprep.subr.bf16.mxu1 %v5965_v8  ;;  %v1055_v8 = vrot.slane %v1027_v4, %v6277_v41  ;;  %v6047_v4 = vld [vmem:[%s7556_s1 + $0xad8] sm:$0xff]  }
 0x100   :  { %5347 = vmatpush3.bf16.msra.mxu0 %v5966_v10  ;;  %v1058_v5 = vcombine.high %v1048_v1, %v1048_v1  ;;  %v1056_v10 = vcombine.high %v1034_v2, %v1034_v2 }
 0x101   :  { %5376 = vmatprep.subr.bf16.mxu0 %v5969_v14  ;;  %v6007_v14 = vld [vmem:[%s7556_s1 + $0x908] sm:$0xff]  }
 0x102   :  { %5369 = vmatpush3.bf16.msra.mxu1 %v5967_v12  ;;  %v6006_v12 = vld [vmem:[%s7556_s1 + $0x9c8] sm:$0xff]  }
 0x103   :  { %4054 = vmatmul.mubr.bf16.vlgmr.msra.gmra.mrb[28].mxu0 %v992_v13  ;;  %5398 = vmatprep.subr.bf16.mxu1 %v5970_v15  ;;  %v1059_v13 = vcombine.high %v1055_v8, %v1055_v8  ;;  %v6008_v15 = vld [vmem:[%s7556_s1 + $0x988] sm:$0xff]  }
 0x104   :  { %5377 = vmatpush3.bf16.msra.mxu0 %v5971_v16  ;;  %4133 = vmatprep.mubr.bf16.mxu0 %v1048_v1  ;;  %v6009_v16 = vld [vmem:[%s7556_s1 + $0x950] sm:$0xff]  }
 0x105   :  { %4094 = vmatmul.mubr.bf16.vlgmr.msra.gmra.mrb[28].mxu1 %v1008_v18  ;;  %5378 = vmatprep.subr.bf16.mxu0 %v5973_v19  ;;  %v6011_v18 = vld [vmem:[%s7556_s1 + $0x910] sm:$0xff]  }
 0x106   :  { %5399 = vmatpush3.bf16.msra.mxu1 %v5972_v17  ;;  %4173 = vmatprep.mubr.bf16.mxu1 %v1058_v5  ;;  %v6010_v17 = vld [vmem:[%s7556_s1 + $0x9d0] sm:$0xff]   ;;  %v6048_v5 = vld [vmem:[%s7556_s1 + $0xa18] sm:$0xff]  }
 0x107   :  { %5400 = vmatprep.subr.bf16.mxu1 %v5974_v20  ;;  %v6012_v19 = vld [vmem:[%s7556_s1 + $0x990] sm:$0xff]   ;;  %v6013_v20 = vld [vmem:[%s7556_s1 + $0x958] sm:$0xff]  }
 0x108   :  { %5379 = vmatpush3.bf16.msra.mxu0 %v5975_v21  ;;  %v6014_v21 = vld [vmem:[%s7556_s1 + $0x9d8] sm:$0xff]   ;;  %v6044_v1 = vld [vmem:[%s7556_s1 + $0xa10] sm:$0xff]  }
 0x109   :  { %5380 = vmatprep.subr.bf16.mxu0 %v5977_v23  ;;  %v6016_v23 = vld [vmem:[%s7556_s1 + $0x998] sm:$0xff]  }
 0x10a   :  { %5401 = vmatpush3.bf16.msra.mxu1 %v5976_v22  ;;  %v6015_v22 = vld [vmem:[%s7556_s1 + $0x918] sm:$0xff]  }
 0x10b   :  { %5402 = vmatprep.subr.bf16.mxu1 %v5978_v24  ;;  %v6017_v24 = vld [vmem:[%s7556_s1 + $0x960] sm:$0xff]  }
 0x10c   :  { %5381 = vmatpush3.bf16.msra.mxu0 %v5979_v25  ;;  %v6018_v25 = vld [vmem:[%s7556_s1 + $0x9e0] sm:$0xff]  }
 0x10d   :  { %5382 = vmatprep.subr.bf16.mxu0 %v5981_v27  ;;  %v6020_v27 = vld [vmem:[%s7556_s1 + $0x9a0] sm:$0xff]  }
 0x10e   :  { %5403 = vmatpush3.bf16.msra.mxu1 %v5980_v26  ;;  %v6019_v26 = vld [vmem:[%s7556_s1 + $0x920] sm:$0xff]  }
 0x10f   :  { %5404 = vmatprep.subr.bf16.mxu1 %v5982_v28  ;;  %v6021_v28 = vld [vmem:[%s7556_s1 + $0x968] sm:$0xff]  }
 0x110   :  { %5383 = vmatpush3.bf16.msra.mxu0 %v5983_v29  ;;  %v6022_v29 = vld [vmem:[%s7556_s1 + $0x9e8] sm:$0xff]  }
 0x111   :  { %5384 = vmatprep.subr.bf16.mxu0 %v5985_v31  ;;  %v6024_v31 = vld [vmem:[%s7556_s1 + $0x9a8] sm:$0xff]  }
 0x112   :  { %5405 = vmatpush3.bf16.msra.mxu1 %v5984_v30  ;;  %v6023_v30 = vld [vmem:[%s7556_s1 + $0x928] sm:$0xff]  }
 0x113   :  { %5406 = vmatprep.subr.bf16.mxu1 %v5986_v32  ;;  %v6025_v32 = vld [vmem:[%s7556_s1 + $0x970] sm:$0xff]  }
 0x114   :  { %5385 = vmatpush3.bf16.msra.mxu0 %v5987_v33 }
 0x115   :  { %5386 = vmatprep.subr.bf16.mxu0 %v5989_v35 }
 0x116   :  { %5407 = vmatpush3.bf16.msra.mxu1 %v5988_v34  ;;  %v5084_v42 = vpop.f32.mrb[4].mxu0  ;;  %v6026_v34 = vld [vmem:[%s7556_s1 + $0x9f0] sm:$0xff]  }
 0x117   :  { %v5085_v44 = vpop.f32.mrb[5].mxu0  ;;  %5408 = vmatprep.subr.bf16.mxu1 %v5990_v36  ;;  %v5106_v46 = vpop.f32.mrb[4].mxu1  ;;  %v6027_v36 = vld [vmem:[%s7556_s1 + $0x930] sm:$0xff]  }
 0x118   :  { %v5086_v47 = vadd.f32 %v5085_v44, %v5084_v42  ;;  %v5087_v48 = vpop.f32.mrb[6].mxu0  ;;  %5387 = vmatpush3.bf16.msra.mxu0 %v5991_v37  ;;  %v5107_v53 = vpop.f32.mrb[5].mxu1  ;;  %v6029_v42 = vld [vmem:[%s7556_s1 + $0x978] sm:$0xff]  }
 0x119   :  { %v5088_v54 = vpop.f32.mrb[7].mxu0  ;;  %5388 = vmatprep.subr.bf16.mxu0 %v5993_v39  ;;  %v5108_v56 = vadd.f32 %v5107_v53, %v5106_v46  ;;  %v5109_v57 = vpop.f32.mrb[6].mxu1  ;;  %v6030_v48 = vld [vmem:[%s7556_s1 + $0x9f8] sm:$0xff]   ;;  %v1041_v53 = vrot.slane %v7102_v62, %v6277_v41  ;;  %v6041_v62 = vld [vmem:[%s7556_s1 + $0xa88] sm:$0xff]  }
 0x11a   :  { %v3576_v55 = vadd.f32 %v5086_v47, %v6996_v11  ;;  %5409 = vmatpush3.bf16.msra.mxu1 %v5992_v38  ;;  %v5110_v60 = vpop.f32.mrb[7].mxu1  ;;  %v6005_v11 = vld [vmem:[%s7556_s1 + $0x948] sm:$0xff]   ;;  %v6034_v54 = vld [vmem:[%s7556_s1 + $0xa40] sm:$0xff]  }
 0x11b   :  { %5410 = vmatprep.subr.bf16.mxu1 %v5994_v40  ;;  %v6028_v40 = vld [vmem:[%s7556_s1 + $0x9b0] sm:$0xff]   ;;  %v6037_v57 = vld [vmem:[%s7556_s1 + $0xa80] sm:$0xff]   ;;  %v6039_v60 = vld [vmem:[%s7556_s1 + $0xac8] sm:$0xff]  }
 0x11c   :  { %v7104_v63 = vadd.f32 %v5108_v56, %v3576_v55  ;;  %5389 = vmatpush3.bf16.msra.mxu0 %v5995_v43  ;;  %v6035_v55 = vld [vmem:[%s7556_s1 + $0xac0] sm:$0xff]  }
 0x11d   :  { %5390 = vmatprep.subr.bf16.mxu0 %v5997_v50  ;;  %v6031_v50 = vld [vmem:[%s7556_s1 + $0x938] sm:$0xff]   ;;  %v6036_v56 = vld [vmem:[%s7556_s1 + $0xa00] sm:$0xff]  }
 0x11e   :  { %5411 = vmatpush3.bf16.msra.mxu1 %v5996_v49 }
 0x11f   :  { %5412 = vmatprep.subr.bf16.mxu1 %v5998_v58  ;;  %v1057_v58 = vcombine.high %v1041_v53, %v1041_v53 }
 0x120   :  { %5391 = vmatpush3.bf16.msra.mxu0 %v5999_v61  ;;  %v6040_v61 = vld [vmem:[%s7556_s1 + $0xa08] sm:$0xff]  }
 0x121   :  { %5420 = vmatprep.subr.bf16.mxu0 %v6001_v3  ;;  %v6046_v3 = vld [vmem:[%s7556_s1 + $0xa58] sm:$0xff]  }
 0x122   :  { %5413 = vmatpush3.bf16.msra.mxu1 %v6000_v0  ;;  %v6043_v0 = vld [vmem:[%s7556_s1 + $0xad0] sm:$0xff]  }
 0x123   :  { %4134 = vmatmul.mubr.bf16.vlgmr.msra.gmra.mrb[32].mxu0 %v1034_v2  ;;  %5442 = vmatprep.subr.bf16.mxu1 %v6002_v6  ;;  %v6045_v2 = vld [vmem:[%s7556_s1 + $0xa90] sm:$0xff]   ;;  %v6049_v6 = vld [vmem:[%s7556_s1 + $0xa98] sm:$0xff]  }
 0x124   :  { %5421 = vmatpush3.bf16.msra.mxu0 %v6003_v7  ;;  %4213 = vmatprep.mubr.bf16.mxu0 %v1055_v8  ;;  %v6050_v7 = vld [vmem:[%s7556_s1 + $0xa60] sm:$0xff]  }
 0x125   :  { %4174 = vmatmul.mubr.bf16.vlgmr.msra.gmra.mrb[32].mxu1 %v1056_v10  ;;  %5422 = vmatprep.subr.bf16.mxu0 %v6005_v11  ;;  %v6051_v8 = vld [vmem:[%s7556_s1 + $0xae0] sm:$0xff]   ;;  %v6054_v11 = vld [vmem:[%s7556_s1 + $0xa68] sm:$0xff]  }
 0x126   :  { %5443 = vmatpush3.bf16.msra.mxu1 %v6004_v9  ;;  %4253 = vmatprep.mubr.bf16.mxu1 %v1059_v13  ;;  %v6052_v9 = vld [vmem:[%s7556_s1 + $0xa20] sm:$0xff]   ;;  %v6056_v13 = vld [vmem:[%s7556_s1 + $0xa28] sm:$0xff]  }
 0x127   :  { %5444 = vmatprep.subr.bf16.mxu1 %v6006_v12  ;;  %v6053_v10 = vld [vmem:[%s7556_s1 + $0xaa0] sm:$0xff]   ;;  %v6055_v12 = vld [vmem:[%s7556_s1 + $0xae8] sm:$0xff]  }
 0x128   :  { %5423 = vmatpush3.bf16.msra.mxu0 %v6007_v14  ;;  %v6057_v14 = vld [vmem:[%s7556_s1 + $0xaa8] sm:$0xff]  }
 0x129   :  { %5424 = vmatprep.subr.bf16.mxu0 %v6009_v16 }
 0x12a   :  { %5445 = vmatpush3.bf16.msra.mxu1 %v6008_v15  ;;  %v6058_v15 = vld [vmem:[%s7556_s1 + $0xa70] sm:$0xff]  }
 0x12b   :  { %5446 = vmatprep.subr.bf16.mxu1 %v6010_v17  ;;  %v6059_v17 = vld [vmem:[%s7556_s1 + $0xaf0] sm:$0xff]  }
 0x12c   :  { %5425 = vmatpush3.bf16.msra.mxu0 %v6011_v18 }
 0x12d   :  { %5426 = vmatprep.subr.bf16.mxu0 %v6013_v20 }
 0x12e   :  { %5447 = vmatpush3.bf16.msra.mxu1 %v6012_v19  ;;  %v6060_v19 = vld [vmem:[%s7556_s1 + $0xa30] sm:$0xff]  }
 0x12f   :  { %5448 = vmatprep.subr.bf16.mxu1 %v6014_v21 }
 0x130   :  { %5427 = vmatpush3.bf16.msra.mxu0 %v6015_v22 }
 0x131   :  { %5428 = vmatprep.subr.bf16.mxu0 %v6017_v24  ;;  %v33_v24 = vld [vmem:[%s7555_s0 + $0x28] sm:$0xff] }
 0x132   :  { %5449 = vmatpush3.bf16.msra.mxu1 %v6016_v23  ;;  %v6062_v23 = vld [vmem:[%s7556_s1 + $0xa78] sm:$0xff]  }
 0x133   :  { %5450 = vmatprep.subr.bf16.mxu1 %v6018_v25 }
 0x134   :  { %5429 = vmatpush3.bf16.msra.mxu0 %v6019_v26 }
 0x135   :  { %5430 = vmatprep.subr.bf16.mxu0 %v6021_v28  ;;  %v1060_v28 = vcombine.high %v33_v24, %v33_v24 }
 0x136   :  { %5451 = vmatpush3.bf16.msra.mxu1 %v6020_v27  ;;  %v5128_v33 = vpop.f32.mrb[8].mxu0  ;;  %v1067_v27 = vrot.slane %v33_v24, %v6277_v41 }
 0x137   :  { %v5129_v35 = vpop.f32.mrb[9].mxu0  ;;  %5452 = vmatprep.subr.bf16.mxu1 %v6022_v29 }
 0x138   :  { %v5150_v37 = vpop.f32.mrb[8].mxu1  ;;  %v5130_v38 = vadd.f32 %v5129_v35, %v5128_v33  ;;  %v5131_v39 = vpop.f32.mrb[10].mxu0  ;;  %5431 = vmatpush3.bf16.msra.mxu0 %v6023_v30  ;;  %v1075_v35 = vcombine.high %v1067_v27, %v1067_v27 }
 0x139   :  { %v5151_v43 = vpop.f32.mrb[9].mxu1  ;;  %v5132_v44 = vpop.f32.mrb[11].mxu0  ;;  %5432 = vmatprep.subr.bf16.mxu0 %v6025_v32  ;;  %v6061_v32 = vld [vmem:[%s7556_s1 + $0xab0] sm:$0xff]  }
 0x13a   :  { %v3656_v45 = vadd.f32 %v5130_v38, %v7104_v63  ;;  %v5152_v46 = vadd.f32 %v5151_v43, %v5150_v37  ;;  %v5153_v47 = vpop.f32.mrb[10].mxu1  ;;  %5453 = vmatpush3.bf16.msra.mxu1 %v6024_v31  ;;  %v6042_v63 = vld [vmem:[%s7556_s1 + $0xa50] sm:$0xff]   ;;  %v6064_v38 = vld [vmem:[%s7556_s1 + $0xa38] sm:$0xff]   ;;  %v1097_v39 = vrot.slane %v1075_v35, %v6277_v41 }
 0x13b   :  { %v5154_v49 = vpop.f32.mrb[11].mxu1  ;;  %5454 = vmatprep.subr.bf16.mxu1 %v6026_v34  ;;  %v6063_v34 = vld [vmem:[%s7556_s1 + $0xaf8] sm:$0xff]  }
 0x13c   :  { %v7208_v51 = vadd.f32 %v5152_v46, %v3656_v45  ;;  %5433 = vmatpush3.bf16.msra.mxu0 %v6027_v36  ;;  %v7311_v36 = vrot.slane %v1060_v28, %v6277_v41  ;;  %v6065_v44 = vld [vmem:[%s7556_s1 + $0xab8] sm:$0xff]   ;;  %v1107_v45 = vcombine.high %v1097_v39, %v1097_v39  ;;  %v6067_v46 = vld [vmem:[%s7556_s1 + $0xbc0] sm:$0xff]  }
 0x13d   :  { %5434 = vmatprep.subr.bf16.mxu0 %v6029_v42  ;;  %v6066_v42 = vld [vmem:[%s7556_s1 + $0xb40] sm:$0xff]  }
 0x13e   :  { %5455 = vmatpush3.bf16.msra.mxu1 %v6028_v40  ;;  %v1083_v40 = vrot.slane %v1067_v27, %v6277_v41  ;;  %v1076_v43 = vcombine.high %v7311_v36, %v7311_v36 }
 0x13f   :  { %5456 = vmatprep.subr.bf16.mxu1 %v6030_v48  ;;  %v6068_v48 = vld [vmem:[%s7556_s1 + $0xb00] sm:$0xff]  }
 0x140   :  { %5435 = vmatpush3.bf16.msra.mxu0 %v6031_v50  ;;  %v1104_v47 = vrot.slane %v1076_v43, %v6277_v41  ;;  %v1105_v49 = vcombine.high %v1083_v40, %v1083_v40  ;;  %v6070_v50 = vld [vmem:[%s7556_s1 + $0xb48] sm:$0xff]  }
 0x141   :  { %5464 = vmatprep.subr.bf16.mxu0 %v6034_v54  ;;  %v6072_v54 = vld [vmem:[%s7556_s1 + $0xb08] sm:$0xff]  }
 0x142   :  { %5457 = vmatpush3.bf16.msra.mxu1 %v6032_v52  ;;  %v1108_v52 = vcombine.high %v1104_v47, %v1104_v47 }
 0x143   :  { %4214 = vmatmul.mubr.bf16.vlgmr.msra.gmra.mrb[36].mxu0 %v1041_v53  ;;  %5486 = vmatprep.subr.bf16.mxu1 %v6035_v55  ;;  %v6071_v53 = vld [vmem:[%s7556_s1 + $0xbc8] sm:$0xff]   ;;  %v6074_v55 = vld [vmem:[%s7556_s1 + $0xb50] sm:$0xff]  }
 0x144   :  { %5465 = vmatpush3.bf16.msra.mxu0 %v6036_v56  ;;  %4293 = vmatprep.mubr.bf16.mxu0 %v1097_v39  ;;  %v6073_v56 = vld [vmem:[%s7556_s1 + $0xb88] sm:$0xff]  }
 0x145   :  { %4254 = vmatmul.mubr.bf16.vlgmr.msra.gmra.mrb[36].mxu1 %v1057_v58  ;;  %5466 = vmatprep.subr.bf16.mxu0 %v6038_v59  ;;  %v6076_v58 = vld [vmem:[%s7556_s1 + $0xb10] sm:$0xff]   ;;  %v6078_v59 = vld [vmem:[%s7556_s1 + $0xb58] sm:$0xff]  }
 0x146   :  { %5487 = vmatpush3.bf16.msra.mxu1 %v6037_v57  ;;  %4333 = vmatprep.mubr.bf16.mxu1 %v1107_v45  ;;  %v6075_v57 = vld [vmem:[%s7556_s1 + $0xbd0] sm:$0xff]  }
 0x147   :  { %5488 = vmatprep.subr.bf16.mxu1 %v6039_v60  ;;  %v6077_v60 = vld [vmem:[%s7556_s1 + $0xb90] sm:$0xff]  }
 0x148   :  { %5467 = vmatpush3.bf16.msra.mxu0 %v6040_v61  ;;  %v6079_v61 = vld [vmem:[%s7556_s1 + $0xbd8] sm:$0xff]  }
 0x149   :  { %5468 = vmatprep.subr.bf16.mxu0 %v6042_v63  ;;  %v6082_v63 = vld [vmem:[%s7556_s1 + $0xb60] sm:$0xff]  }
 0x14a   :  { %5489 = vmatpush3.bf16.msra.mxu1 %v6041_v62  ;;  %v6080_v62 = vld [vmem:[%s7556_s1 + $0xb18] sm:$0xff]  }
 0x14b   :  { %5490 = vmatprep.subr.bf16.mxu1 %v6043_v0  ;;  %v6081_v0 = vld [vmem:[%s7556_s1 + $0xb98] sm:$0xff]  }
 0x14c   :  { %5469 = vmatpush3.bf16.msra.mxu0 %v6044_v1  ;;  %v6083_v1 = vld [vmem:[%s7556_s1 + $0xbe0] sm:$0xff]  }
 0x14d   :  { %5470 = vmatprep.subr.bf16.mxu0 %v6046_v3  ;;  %v6086_v3 = vld [vmem:[%s7556_s1 + $0xb68] sm:$0xff]  }
 0x14e   :  { %5491 = vmatpush3.bf16.msra.mxu1 %v6045_v2  ;;  %v6084_v2 = vld [vmem:[%s7556_s1 + $0xb20] sm:$0xff]  }
 0x14f   :  { %5492 = vmatprep.subr.bf16.mxu1 %v6047_v4  ;;  %v6085_v4 = vld [vmem:[%s7556_s1 + $0xba0] sm:$0xff]  }
 0x150   :  { %5471 = vmatpush3.bf16.msra.mxu0 %v6048_v5  ;;  %v6087_v5 = vld [vmem:[%s7556_s1 + $0xbe8] sm:$0xff]  }
 0x151   :  { %5472 = vmatprep.subr.bf16.mxu0 %v6050_v7  ;;  %v6090_v7 = vld [vmem:[%s7556_s1 + $0xb70] sm:$0xff]  }
 0x152   :  { %5493 = vmatpush3.bf16.msra.mxu1 %v6049_v6  ;;  %v6088_v6 = vld [vmem:[%s7556_s1 + $0xb28] sm:$0xff]  }
 0x153   :  { %5494 = vmatprep.subr.bf16.mxu1 %v6051_v8 }
 0x154   :  { %5473 = vmatpush3.bf16.msra.mxu0 %v6052_v9  ;;  %v6089_v9 = vld [vmem:[%s7556_s1 + $0xba8] sm:$0xff]  }
 0x155   :  { %5474 = vmatprep.subr.bf16.mxu0 %v6054_v11  ;;  %v6091_v11 = vld [vmem:[%s7556_s1 + $0xbf0] sm:$0xff]  }
 0x156   :  { %5495 = vmatpush3.bf16.msra.mxu1 %v6053_v10  ;;  %v5172_v16 = vpop.f32.mrb[12].mxu0 }
 0x157   :  { %v5173_v18 = vpop.f32.mrb[13].mxu0  ;;  %5496 = vmatprep.subr.bf16.mxu1 %v6055_v12 }
 0x158   :  { %v5194_v20 = vpop.f32.mrb[12].mxu1  ;;  %v5174_v21 = vadd.f32 %v5173_v18, %v5172_v16  ;;  %v5175_v22 = vpop.f32.mrb[14].mxu0  ;;  %5475 = vmatpush3.bf16.msra.mxu0 %v6056_v13  ;;  %v6094_v18 = vld [vmem:[%s7556_s1 + $0xb78] sm:$0xff]  }
 0x159   :  { %v5195_v25 = vpop.f32.mrb[13].mxu1  ;;  %v5176_v26 = vpop.f32.mrb[15].mxu0  ;;  %5476 = vmatprep.subr.bf16.mxu0 %v6058_v15  ;;  %v6092_v15 = vld [vmem:[%s7556_s1 + $0xb30] sm:$0xff]  }
 0x15a   :  { %v3736_v29 = vadd.f32 %v5174_v21, %v7208_v51  ;;  %v5196_v30 = vadd.f32 %v5195_v25, %v5194_v20  ;;  %v5197_v31 = vpop.f32.mrb[14].mxu1  ;;  %5497 = vmatpush3.bf16.msra.mxu1 %v6057_v14  ;;  %v6069_v51 = vld [vmem:[%s7556_s1 + $0xb80] sm:$0xff]  }
 0x15b   :  { %v5198_v33 = vpop.f32.mrb[15].mxu1  ;;  %5498 = vmatprep.subr.bf16.mxu1 %v6059_v17 }
 0x15c   :  { %v7313_v37 = vadd.f32 %v5196_v30, %v3736_v29  ;;  %5477 = vmatpush3.bf16.msra.mxu0 %v6060_v19 }
 0x15d   :  { %5478 = vmatprep.subr.bf16.mxu0 %v6062_v23 }
 0x15e   :  { %5499 = vmatpush3.bf16.msra.mxu1 %v6061_v32 }
 0x15f   :  { %5500 = vmatprep.subr.bf16.mxu1 %v6063_v34 }
 0x160   :  { %5479 = vmatpush3.bf16.msra.mxu0 %v6064_v38 }
 0x161   :  { %5508 = vmatprep.subr.bf16.mxu0 %v6066_v42 }
 0x162   :  { %5501 = vmatpush3.bf16.msra.mxu1 %v6065_v44 }
 0x163   :  { %4294 = vmatmul.mubr.bf16.vlgmr.msra.gmra.mrb[40].mxu0 %v1083_v40  ;;  %5530 = vmatprep.subr.bf16.mxu1 %v6067_v46 }
 0x164   :  { %5509 = vmatpush3.bf16.msra.mxu0 %v6068_v48  ;;  %4373 = vmatprep.mubr.bf16.mxu0 %v1104_v47 }
 0x165   :  { %4334 = vmatmul.mubr.bf16.vlgmr.msra.gmra.mrb[40].mxu1 %v1105_v49  ;;  %5510 = vmatprep.subr.bf16.mxu0 %v6070_v50 }
 0x166   :  { %5531 = vmatpush3.bf16.msra.mxu1 %v6069_v51  ;;  %4413 = vmatprep.mubr.bf16.mxu1 %v1108_v52 }
 0x167   :  { %5532 = vmatprep.subr.bf16.mxu1 %v6071_v53 }
 0x168   :  { %5511 = vmatpush3.bf16.msra.mxu0 %v6072_v54 }
 0x169   :  { %5512 = vmatprep.subr.bf16.mxu0 %v6074_v55 }
 0x16a   :  { %5533 = vmatpush3.bf16.msra.mxu1 %v6073_v56 }
 0x16b   :  { %5534 = vmatprep.subr.bf16.mxu1 %v6075_v57 }
 0x16c   :  { %5513 = vmatpush3.bf16.msra.mxu0 %v6076_v58 }
 0x16d   :  { %5514 = vmatprep.subr.bf16.mxu0 %v6078_v59 }
 0x16e   :  { %5535 = vmatpush3.bf16.msra.mxu1 %v6077_v60 }
 0x16f   :  { %5536 = vmatprep.subr.bf16.mxu1 %v6079_v61 }
 0x170   :  { %5515 = vmatpush3.bf16.msra.mxu0 %v6080_v62 }
 0x171   :  { %5516 = vmatprep.subr.bf16.mxu0 %v6082_v63 }
 0x172   :  { %5537 = vmatpush3.bf16.msra.mxu1 %v6081_v0 }
 0x173   :  { %5538 = vmatprep.subr.bf16.mxu1 %v6083_v1 }
 0x174   :  { %5517 = vmatpush3.bf16.msra.mxu0 %v6084_v2 }
 0x175   :  { %5518 = vmatprep.subr.bf16.mxu0 %v6086_v3 }
 0x176   :  { %5539 = vmatpush3.bf16.msra.mxu1 %v6085_v4  ;;  %v5216_v8 = vpop.f32.mrb[16].mxu0 }
 0x177   :  { %v5217_v10 = vpop.f32.mrb[17].mxu0  ;;  %5540 = vmatprep.subr.bf16.mxu1 %v6087_v5 }
 0x178   :  { %v5238_v12 = vpop.f32.mrb[16].mxu1  ;;  %v5218_v13 = vadd.f32 %v5217_v10, %v5216_v8  ;;  %v5219_v14 = vpop.f32.mrb[18].mxu0  ;;  %5519 = vmatpush3.bf16.msra.mxu0 %v6088_v6 }
 0x179   :  { %v5239_v16 = vpop.f32.mrb[17].mxu1  ;;  %v5220_v17 = vpop.f32.mrb[19].mxu0  ;;  %5520 = vmatprep.subr.bf16.mxu0 %v6090_v7 }
 0x17a   :  { %12 = vsyncpa [#allocation3], 0  ;;  %v3816_v19 = vadd.f32 %v5218_v13, %v7313_v37  ;;  %v5240_v20 = vadd.f32 %v5239_v16, %v5238_v12  ;;  %v5241_v21 = vpop.f32.mrb[18].mxu1  ;;  %5541 = vmatpush3.bf16.msra.mxu1 %v6089_v9  ;;  %v6093_v22 = vld [vmem:[%s7556_s1 + $0xbb0] sm:$0xff]   ;;  %v6095_v24 = vld [vmem:[%s7556_s1 + $0xbf8] sm:$0xff]   ;;  %v1090_v27 = vrot.slane %v7311_v36, %v6277_v41  ;;  %v6128_v57 = vmov 0.0|0.0  }
 0x17b   :  { %v5242_v23 = vpop.f32.mrb[19].mxu1  ;;  %5542 = vmatprep.subr.bf16.mxu1 %v6091_v11  ;;  %v6096_v26 = vld [vmem:[%s7556_s1 + $0xb38] sm:$0xff]   ;;  %v4422_v54 = vld [vmem:[%s7558_s3] sm:$0xff]  ;;  %v4423_v55 = vld [vmem:[%s7558_s3 + $0x8] sm:$0xff]  ;;  %vm6129_vm0 = vmmov 0   ;;  %vm4609_vm1 = vcmask 1041408  }
 0x17c   :  { %v3856_v25 = vadd.f32 %v5240_v20, %v3816_v19  ;;  %5521 = vmatpush3.bf16.msra.mxu0 %v6092_v15  ;;  %v6097_v28 = vld [vmem:[%s7556_s1 + $0xbb8] sm:$0xff]   ;;  %v1106_v29 = vcombine.high %v1090_v27, %v1090_v27  ;;  %v4424_v56 = vld [vmem:[%s7558_s3 + $0x10] sm:$0xff]  ;;  %v5657_v58 = vpack.c.bf16 %v4423_v55, %v4422_v54  ;;  %v4426_v61 = vld [vmem:[%s7558_s3 + $0x20] sm:$0xff] }
 0x17d   :  { %5522 = vmatprep.subr.bf16.mxu0 %v6094_v18  ;;  %v4425_v59 = vld [vmem:[%s7558_s3 + $0x18] sm:$0xff]  ;;  %v4427_v62 = vld [vmem:[%s7558_s3 + $0x28] sm:$0xff]  ;;  %v4428_v0 = vld [vmem:[%s7558_s3 + $0x30] sm:$0xff] }
 0x17e   :  { %5543 = vmatpush3.bf16.msra.mxu1 %v6093_v22  ;;  %v5660_v60 = vpack.c.bf16 %v4425_v59, %v4424_v56  ;;  %v5663_v63 = vpack.c.bf16 %v4427_v62, %v4426_v61  ;;  %v4429_v1 = vld [vmem:[%s7558_s3 + $0x38] sm:$0xff]  ;;  %v4430_v3 = vld [vmem:[%s7558_s3 + $0x40] sm:$0xff]  ;;  %v4431_v4 = vld [vmem:[%s7558_s3 + $0x48] sm:$0xff] }
 0x17f   :  { %5544 = vmatprep.subr.bf16.mxu1 %v6095_v24  ;;  %v5666_v2 = vpack.c.bf16 %v4429_v1, %v4428_v0  ;;  %v5669_v5 = vpack.c.bf16 %v4431_v4, %v4430_v3  ;;  %v4432_v6 = vld [vmem:[%s7558_s3 + $0x50] sm:$0xff]  ;;  %v4433_v7 = vld [vmem:[%s7558_s3 + $0x58] sm:$0xff]  ;;  %v4434_v14 = vld [vmem:[%s7558_s3 + $0x60] sm:$0xff] }
 0x180   :  { %5523 = vmatpush3.bf16.msra.mxu0 %v6096_v26  ;;  %v5672_v8 = vpack.c.bf16 %v4433_v7, %v4432_v6  ;;  %v4435_v15 = vld [vmem:[%s7558_s3 + $0x68] sm:$0xff]  ;;  %v4436_v24 = vld [vmem:[%s7558_s3 + $0x70] sm:$0xff] }
 0x181   :  { %5656 = vmatprep.subr.bf16.mxu0 %v6128_v57  ;;  %v5675_v18 = vpack.c.bf16 %v4435_v15, %v4434_v14 }
 0x182   :  { %5545 = vmatpush3.bf16.msra.mxu1 %v6097_v28  ;;  %v4516_v28 = vld [vmem:[%s7560_s5] sm:$0xff] }
 0x183   :  { %4374 = vmatmul.mubr.bf16.vlgmr.msra.gmra.mrb[44].mxu0 %v1090_v27  ;;  %5680 = vmatprep.subr.bf16.mxu1 %v6128_v57  ;;  %v6130_v27 = vmov 0.0  }
 0x184   :  { %5658 = vmatpush3.bf16.msra.mxu0 %v5657_v58  ;;  %5618 = vmatprep.mubr.msk.f32.mxu0 %vm6129_vm0, %v6130_v27 }
 0x185   :  { %4414 = vmatmul.mubr.bf16.vlgmr.msra.gmra.mrb[44].mxu1 %v1106_v29  ;;  %5659 = vmatprep.subr.bf16.mxu0 %v6128_v57  ;;  %v4517_v29 = vld [vmem:[%s7560_s5 + $0x8] sm:$0xff] }
 0x186   :  { %5653 = vmatprep.mubr.msk.f32.mxu1 %vm6129_vm0, %v6130_v27 }
 0x188   :  { %5661 = vmatpush3.bf16.msra.mxu0 %v5660_v60 }
 0x189   :  { %5662 = vmatprep.subr.bf16.mxu0 %v6128_v57 }
 0x18c   :  { %5664 = vmatpush3.bf16.msra.mxu0 %v5663_v63 }
 0x18d   :  { %5665 = vmatprep.subr.bf16.mxu0 %v6128_v57 }
 0x190   :  { %5667 = vmatpush3.bf16.msra.mxu0 %v5666_v2 }
 0x191   :  { %5668 = vmatprep.subr.bf16.mxu0 %v6128_v57 }
 0x194   :  { %5670 = vmatpush3.bf16.msra.mxu0 %v5669_v5 }
 0x195   :  { %5671 = vmatprep.subr.bf16.mxu0 %v6128_v57 }
 0x196   :  { %v5260_v30 = vpop.f32.mrb[20].mxu0 }
 0x197   :  { %v5261_v31 = vpop.f32.mrb[21].mxu0 }
 0x198   :  { %v5282_v32 = vpop.f32.mrb[20].mxu1  ;;  %v5262_v33 = vadd.f32 %v5261_v31, %v5260_v30  ;;  %v5263_v34 = vpop.f32.mrb[22].mxu0  ;;  %5673 = vmatpush3.bf16.msra.mxu0 %v5672_v8  ;;  %v4518_v30 = vld [vmem:[%s7560_s5 + $0x10] sm:$0xff]  ;;  %v5681_v31 = vpack.c.bf16 %v4517_v29, %v4516_v28 }
 0x199   :  { %v5283_v35 = vpop.f32.mrb[21].mxu1  ;;  %v5264_v37 = vpop.f32.mrb[23].mxu0  ;;  %5674 = vmatprep.subr.bf16.mxu0 %v6128_v57  ;;  %v4520_v34 = vld [vmem:[%s7560_s5 + $0x20] sm:$0xff] }
 0x19a   :  { %v3896_v38 = vadd.f32 %v5262_v33, %v3856_v25  ;;  %v5284_v41 = vadd.f32 %v5283_v35, %v5282_v32  ;;  %v5285_v36 = vpop.f32.mrb[22].mxu1  ;;  %v4437_v25 = vld [vmem:[%s7558_s3 + $0x78] sm:$0xff]  ;;  %5682 = vmatpush3.bf16.msra.mxu1 %v5681_v31  ;;  %v4521_v35 = vld [vmem:[%s7560_s5 + $0x28] sm:$0xff] }
 0x19b   :  { %v5286_v39 = vpop.f32.mrb[23].mxu1  ;;  %v5678_v26 = vpack.c.bf16 %v4437_v25, %v4436_v24  ;;  %v4519_v32 = vld [vmem:[%s7560_s5 + $0x18] sm:$0xff]  ;;  %5683 = vmatprep.subr.bf16.mxu1 %v6128_v57  ;;  %v5687_v37 = vpack.c.bf16 %v4521_v35, %v4520_v34  ;;  %v4530_v34 = vld [vmem:[%s7560_s5 + $0x70] sm:$0xff] }
 0x19c   :  { %v3936_v40 = vadd.f32 %v5284_v41, %v3896_v38  ;;  %5676 = vmatpush3.bf16.msra.mxu0 %v5675_v18  ;;  %v5684_v33 = vpack.c.bf16 %v4519_v32, %v4518_v30  ;;  %v4522_v38 = vld [vmem:[%s7560_s5 + $0x30] sm:$0xff]  ;;  %v4523_v41 = vld [vmem:[%s7560_s5 + $0x38] sm:$0xff]  ;;  %v4524_v39 = vld [vmem:[%s7560_s5 + $0x40] sm:$0xff] }
 0x19d   :  { %5677 = vmatprep.subr.bf16.mxu0 %v6128_v57  ;;  %v5690_v36 = vpack.c.bf16 %v4523_v41, %v4522_v38  ;;  %v4531_v35 = vld [vmem:[%s7560_s5 + $0x78] sm:$0xff]  ;;  %v5022_v38 = vld [vmem:[%s7559_s4] ss:$0 sm:$0xff]  ;;  %s6131_s4 = smov [#allocation2]  }
 0x19e   :  { %5685 = vmatpush3.bf16.msra.mxu1 %v5684_v33 }
 0x19f   :  { %5686 = vmatprep.subr.bf16.mxu1 %v6128_v57 }
 0x1a0   :  { %5679 = vmatpush3.bf16.msra.mxu0 %v5678_v26 }
 0x1a2   :  { %5688 = vmatpush3.bf16.msra.mxu1 %v5687_v37  ;;  %v5702_v37 = vpack.c.bf16 %v4531_v35, %v4530_v34 }
 0x1a3   :  { %5689 = vmatprep.subr.bf16.mxu1 %v6128_v57 }
 0x1a6   :  { %5691 = vmatpush3.bf16.msra.mxu1 %v5690_v36 }
 0x1a7   :  { %5692 = vmatprep.subr.bf16.mxu1 %v6128_v57 }
 0x1b6   :  { %v5304_v42 = vpop.f32.mrb[24].mxu0 }
 0x1b7   :  { %v5305_v43 = vpop.f32.mrb[25].mxu0 }
 0x1b8   :  { %v5326_v44 = vpop.f32.mrb[24].mxu1  ;;  %v5306_v45 = vadd.f32 %v5305_v43, %v5304_v42  ;;  %v5307_v46 = vpop.f32.mrb[26].mxu0  ;;  %v4526_v43 = vld [vmem:[%s7560_s5 + $0x50] sm:$0xff] }
 0x1b9   :  { %v5327_v47 = vpop.f32.mrb[25].mxu1  ;;  %v5308_v48 = vpop.f32.mrb[27].mxu0  ;;  %v4528_v46 = vld [vmem:[%s7560_s5 + $0x60] sm:$0xff] }
 0x1ba   :  { %v3976_v49 = vadd.f32 %v5306_v45, %v3936_v40  ;;  %v5328_v50 = vadd.f32 %v5327_v47, %v5326_v44  ;;  %v5329_v51 = vpop.f32.mrb[26].mxu1  ;;  %v4525_v40 = vld [vmem:[%s7560_s5 + $0x48] sm:$0xff]  ;;  %v4527_v44 = vld [vmem:[%s7560_s5 + $0x58] sm:$0xff] }
 0x1bb   :  { %v5330_v52 = vpop.f32.mrb[27].mxu1  ;;  %v5693_v42 = vpack.c.bf16 %v4525_v40, %v4524_v39  ;;  %v5696_v45 = vpack.c.bf16 %v4527_v44, %v4526_v43  ;;  %v4529_v47 = vld [vmem:[%s7560_s5 + $0x68] sm:$0xff]  ;;  %s4629_s5 = sshll.u32 %s6131_s4, 4  ;;  %s4630_s5 = int_to_ptr.vmem [resolvable:$true] %s4629_s5 }
 0x1bc   :  { %v4016_v53 = vadd.f32 %v5328_v50, %v3976_v49  ;;  %v5699_v50 = vpack.c.bf16 %v4529_v47, %v4528_v46  ;;  %p6108_p1 = scmp.lt.s32.totalorder %s4630_s5, %s4630_s5 }
 0x1bd   :  { %5694 = vmatpush3.bf16.msra.mxu1 %v5693_v42  ;;  %v5023_v42 = vld [vmem:[%s7561_s6] ss:$0 sm:$0xff]  ;;  %s6103_s6 = scalar_lea.vmem %s4630_s5, 32 }
 0x1be   :  { %5695 = vmatprep.subr.bf16.mxu1 %v6128_v57  ;;  %p6104_p0 = scmp.ne.s32.totalorder %s4630_s5, %s6103_s6  ;;  %p6109_p2 = scmp.lt.s32.totalorder %s6103_s6, %s6103_s6 }
 0x1c0   :  { %p6110_p3 = por %p6109_p2, %p6108_p1 }
 0x1c1   :  { %5697 = vmatpush3.bf16.msra.mxu1 %v5696_v45 }
 0x1c2   :  { %5698 = vmatprep.subr.bf16.mxu1 %v6128_v57  ;;  %p6111_p4 = pnand %p6110_p3, %p6104_p0 }
 0x1c5   :  { %5700 = vmatpush3.bf16.msra.mxu1 %v5699_v50 }
 0x1c6   :  { %5701 = vmatprep.subr.bf16.mxu1 %v6128_v57 }
 0x1c9   :  { %5703 = vmatpush3.bf16.msra.mxu1 %v5702_v37 }
 0x1d6   :  { %v5348_v9 = vpop.f32.mrb[28].mxu0 }
 0x1d7   :  { %v5349_v10 = vpop.f32.mrb[29].mxu0 }
 0x1d8   :  { %v5370_v11 = vpop.f32.mrb[28].mxu1  ;;  %v5350_v12 = vadd.f32 %v5349_v10, %v5348_v9  ;;  %v5351_v13 = vpop.f32.mrb[30].mxu0 }
 0x1d9   :  { %v5371_v16 = vpop.f32.mrb[29].mxu1  ;;  %v5352_v17 = vpop.f32.mrb[31].mxu0 }
 0x1da   :  { %v4056_v19 = vadd.f32 %v5350_v12, %v4016_v53  ;;  %v5372_v20 = vadd.f32 %v5371_v16, %v5370_v11  ;;  %v5373_v21 = vpop.f32.mrb[30].mxu1 }
 0x1db   :  { %v5374_v22 = vpop.f32.mrb[31].mxu1 }
 0x1dc   :  { %v4096_v23 = vadd.f32 %v5372_v20, %v4056_v19 }
 0x1f6   :  { %v5392_v48 = vpop.f32.mrb[32].mxu0 }
 0x1f7   :  { %v5393_v49 = vpop.f32.mrb[33].mxu0 }
 0x1f8   :  { %v5414_v51 = vpop.f32.mrb[32].mxu1  ;;  %v5394_v52 = vadd.f32 %v5393_v49, %v5392_v48  ;;  %v5395_v53 = vpop.f32.mrb[34].mxu0 }
 0x1f9   :  { %v5415_v54 = vpop.f32.mrb[33].mxu1  ;;  %v5396_v55 = vpop.f32.mrb[35].mxu0 }
 0x1fa   :  { %v4136_v56 = vadd.f32 %v5394_v52, %v4096_v23  ;;  %v5416_v58 = vadd.f32 %v5415_v54, %v5414_v51  ;;  %v5417_v59 = vpop.f32.mrb[34].mxu1 }
 0x1fb   :  { %v5418_v60 = vpop.f32.mrb[35].mxu1 }
 0x1fc   :  { %v4176_v61 = vadd.f32 %v5416_v58, %v4136_v56 }
 0x216   :  { %v5436_v62 = vpop.f32.mrb[36].mxu0 }
 0x217   :  { %v5437_v63 = vpop.f32.mrb[37].mxu0 }
 0x218   :  { %v5458_v0 = vpop.f32.mrb[36].mxu1  ;;  %v5438_v1 = vadd.f32 %v5437_v63, %v5436_v62  ;;  %v5439_v2 = vpop.f32.mrb[38].mxu0 }
 0x219   :  { %v5459_v3 = vpop.f32.mrb[37].mxu1  ;;  %v5440_v4 = vpop.f32.mrb[39].mxu0 }
 0x21a   :  { %v4216_v5 = vadd.f32 %v5438_v1, %v4176_v61  ;;  %v5460_v6 = vadd.f32 %v5459_v3, %v5458_v0  ;;  %v5461_v7 = vpop.f32.mrb[38].mxu1 }
 0x21b   :  { %v5462_v8 = vpop.f32.mrb[39].mxu1 }
 0x21c   :  { %v4256_v9 = vadd.f32 %v5460_v6, %v4216_v5 }
 0x236   :  { %v5480_v10 = vpop.f32.mrb[40].mxu0 }
 0x237   :  { %v5481_v11 = vpop.f32.mrb[41].mxu0 }
 0x238   :  { %v5502_v12 = vpop.f32.mrb[40].mxu1  ;;  %v5482_v13 = vadd.f32 %v5481_v11, %v5480_v10  ;;  %v5483_v14 = vpop.f32.mrb[42].mxu0 }
 0x239   :  { %v5503_v15 = vpop.f32.mrb[41].mxu1  ;;  %v5484_v16 = vpop.f32.mrb[43].mxu0 }
 0x23a   :  { %v4296_v57 = vadd.f32 %v5482_v13, %v4256_v9  ;;  %v5504_v17 = vadd.f32 %v5503_v15, %v5502_v12  ;;  %v5505_v18 = vpop.f32.mrb[42].mxu1 }
 0x23b   :  { %v5506_v19 = vpop.f32.mrb[43].mxu1 }
 0x23c   :  { %v4336_v20 = vadd.f32 %v5504_v17, %v4296_v57 }
 0x256   :  { %v5524_v21 = vpop.f32.mrb[44].mxu0 }
 0x257   :  { %v5525_v22 = vpop.f32.mrb[45].mxu0 }
 0x258   :  { %v5546_v23 = vpop.f32.mrb[44].mxu1  ;;  %v5526_v24 = vadd.f32 %v5525_v22, %v5524_v21  ;;  %v5527_v25 = vpop.f32.mrb[46].mxu0 }
 0x259   :  { %v5547_v26 = vpop.f32.mrb[45].mxu1  ;;  %v5528_v27 = vpop.f32.mrb[47].mxu0 }
 0x25a   :  { %v4376_v28 = vadd.f32 %v5526_v24, %v4336_v20  ;;  %v5548_v29 = vadd.f32 %v5547_v26, %v5546_v23  ;;  %v5549_v30 = vpop.f32.mrb[46].mxu1 }
 0x25b   :  { %v5550_v31 = vpop.f32.mrb[47].mxu1 }
 0x25c   :  { %v4416_v32 = vadd.f32 %v5548_v29, %v4376_v28 }
 0x25e   :  { %v4421_v33 = vmax.f32 %v4416_v32, 0.0 }
 0x260   :  { %5619 = vmatmul.mubr.f32.vlgmr.msra.gmra.mrb[48].mxu0 %v4421_v33 }
 0x333   :  { %v4511_v41 = vpop.f32.mrb[48].mxu0 }
 0x334   :  { %v4512_v36 = vadd.f32 %v5022_v38, %v4511_v41  ;;  %v5620_v39 = vpop.f32.mrb[49].mxu0 }
 0x336   :  { %v4515_v40 = vmax.f32 %v4512_v36, 0.0 }
 0x338   :  { %5654 = vmatmul.mubr.f32.vlgmr.msra.gmra.mrb[48].mxu1 %v4515_v40 }
 0x40b   :  { %v4605_v43 = vpop.f32.mrb[48].mxu1 }
 0x40c   :  { %v4606_v44 = vadd.f32 %v5023_v42, %v4605_v43  ;;  %v5655_v45 = vpop.f32.mrb[49].mxu1 }
 0x40e   :  { %v4610_v46 = vsel %vm4609_vm1, %v4606_v44, -inf }
 0x40f   :  { %4611 = vmax.xlane.f32.xlu0 %v4610_v46 }
 0x49c   :  { %v4612_v47 = vpop.xlane.xlu0 %4611 }
 0x49d   :  { %v4613_v48 = vsub.f32 %v4606_v44, %v4612_v47 }
 0x49f   :  { %v4614_v49 = vmul.f32 1.442695, %v4613_v48 }
 0x4a1   :  { %6099 = vpow2.f32 %v4614_v49 }
 0x4ab   :  { %v6100_v50 = vpop.eup %6099 }
 0x4ac   :  { %v4616_v51 = vsel %vm4609_vm1, %v6100_v50, 0.0 }
 0x4ad   :  { %4617 = vadd.xlane.f32.xlu0 %v4616_v51 }
 0x53a   :  { %v4618_v52 = vpop.xlane.xlu0 %4617 }
 0x53b   :  { %6101 = vlog2.f32 %v4618_v52 }
 0x545   :  { %v6102_v53 = vpop.eup %6101 }
 0x546   :  { %v4620_v54 = vmul.f32 0.6931472, %v6102_v53 }
 0x548   :  { %v4621_v55 = vsub.f32 %v4613_v48, %v4620_v54 }
 0x54a   :  { %4622 = vst [vmem:[#allocation2] sm:$0x3] %v4621_v55 }
 0x54b   :  { %6114 = shalt.err (!%p6111_p4)
}
 0x54c   :  { %s6115_s23 = scalar_lea.hbm %s7562_s7, 32 }
 0x54d   :  { %p6116_p5 = scmp.ne.s32.totalorder %s7562_s7, %s6115_s23  ;;  %p6119_p6 = scmp.lt.u32.totalorder %s6115_s23, %s7562_s7 }
 0x54f   :  { %p6121_p7 = pnand %p6119_p6, %p6116_p5 }
 0x551   :  { %6124 = shalt.err (!%p6121_p7)
}
 0x552   :  { %4632 = dma.vmem_to_hbm [thread:$0]  %s4630_s5, 32, %s7562_s7, [#allocation3]  }
 0x553   :  { %6125 = dma.done.wait [#allocation3], 32  }
 0x554   :  { %6126 = vsyncadd [#allocation3], 4294967264 }
 0x555   :  { %4636 = vsyncpa [#allocation3], 1 }

</bundles_post_ra>
